<compile_context>
chip_gen: v7x
topology: tpu7x:2x2x1
jax: 0.10.0
libtpu: 0.0.40
codegen_flags: <defaults>
</compile_context>

<pallas_src>
import jax
import jax.numpy as jnp
from jax.experimental import pallas as pl
from jax.experimental.pallas import tpu as pltpu

IN_FEATURES = 10
OUT_FEATURES = 5

PACK = 64                          # original rows packed per lane-dense slab row
X_LANES = IN_FEATURES * PACK       # 640 = lcm(10, 128): dense, multiple of 128
O_LANES = OUT_FEATURES * PACK      # 320: 2.5 vregs wide (vs 5-wide masked stores)
_SUBLANES = 8                      # f32 sublane tile

# Rows per grid step: 32768 rows -> ~1.3 MiB of x per step, far above the
# ~0.35 us fixed per-step overhead at any generation's HBM bandwidth, while the
# VMEM arithmetic in the header stays ~9 MiB.
DEFAULT_BLOCK_M = 32768

# Below ~1e5 rows the launch + lost-fusion cost exceeds the op itself.
PALLAS_MIN_ROWS = 1 << 17


def _round_up(n: int, m: int) -> int:
    return ((n + m - 1) // m) * m


def _split_f32_to_bf16(x):
    """hi/lo bf16 split: hi + lo reproduces x to ~2^-16 relative."""
    hi = x.astype(jnp.bfloat16)
    lo = (x - hi.astype(jnp.float32)).astype(jnp.bfloat16)
    return hi, lo


def _linear_kernel(x_ref, w_hi_ref, w_lo_ref, b_ref, o_ref):
    # x_ref:   (R, 640) f32  -- 64 packed input rows per slab row
    # w_*_ref: (640, 320) bf16 -- block-diagonal kron(I_64, W.T), hi/lo split
    # b_ref:   (1, 320) f32  -- bias tiled 64x
    # o_ref:   (R, 320) f32  -- 64 packed output rows per slab row
    #
    # Roofline per original row: HBM = 60 B (read 40 + write 20); MXU work =
    # 3 passes * 2*640*320 / 64 = 19.2 kFLOP (bf16) -> below/at the HBM time on
    # v6e/v7x and within ~1.3x of it on v5e, so the kernel stays read-bound.
    x = x_ref[...]
    x_hi, x_lo = _split_f32_to_bf16(x)
    w_hi = w_hi_ref[...]
    acc = jnp.dot(x_hi, w_hi, preferred_element_type=jnp.float32)
    acc += jnp.dot(x_lo, w_hi, preferred_element_type=jnp.float32)
    acc += jnp.dot(x_hi, w_lo_ref[...], preferred_element_type=jnp.float32)
    o_ref[...] = acc + b_ref[...]


def _pick_block_rows(rows: int, block_m: int) -> int:
    """Slab rows per grid step (each slab row = PACK original rows)."""
    if rows <= _SUBLANES:
        return rows                              # tiny: one block == full array
    cap = _round_up(max(block_m // PACK, _SUBLANES), _SUBLANES)
    if cap >= rows:
        # Whole problem would fit a single step: use (at least) two steps so
        # both v7x TensorCores get work; harmless on single-TC v5e/v6e.
        return _round_up(pl.cdiv(rows, 2), _SUBLANES)
    return cap


def linear_pallas(x, weight, bias, *, block_m=DEFAULT_BLOCK_M):
    """Pallas forward of nn.Linear(10, 5): x (M, 10) -> (M, 5), f32.

    `weight` is torch-layout (5, 10); `bias` is (5,).  Params stay in f32.
    """
    if x.ndim != 2 or x.shape[1] != IN_FEATURES:
        raise ValueError(f"expected (M, {IN_FEATURES}) input, got {x.shape}")
    m = x.shape[0]
    x = x.astype(jnp.float32)
    w_t = weight.astype(jnp.float32).T                    # (10, 5)
    b = bias.astype(jnp.float32)

    # Pad M to a multiple of PACK; padded rows only produce bias-valued garbage
    # that is sliced off (nothing in the kernel can trap on them).
    m_pad = _round_up(max(m, 1), PACK)
    if m_pad != m:
        x = jnp.pad(x, ((0, m_pad - m), (0, 0)))
    rows = m_pad // PACK
    x_packed = x.reshape(rows, X_LANES)                   # free view

    # Block-diagonal weights: one plain matmul consumes the packed layout.
    # hi/lo bf16 split keeps f32-faithful numerics at a known 3-pass MXU cost.
    w_big = jnp.kron(jnp.eye(PACK, dtype=jnp.float32), w_t)      # (640, 320)
    w_hi, w_lo = _split_f32_to_bf16(w_big)
    b_big = jnp.tile(b, PACK).reshape(1, O_LANES)

    block_rows = _pick_block_rows(rows, block_m)
    grid_m = pl.cdiv(rows, block_rows)

    cost = pl.CostEstimate(
        flops=3 * 2 * rows * X_LANES * O_LANES,
        transcendentals=0,
        bytes_accessed=(m_pad * (IN_FEATURES + OUT_FEATURES) * 4
                        + 2 * w_hi.size * 2 + b_big.size * 4),
    )

    out_packed = pl.pallas_call(
        _linear_kernel,
        out_shape=jax.ShapeDtypeStruct((rows, O_LANES), jnp.float32),
        grid=(grid_m,),
        in_specs=[
            # x slabs march down the packed batch axis; dense 2560 B DMA rows.
            pl.BlockSpec((block_rows, X_LANES), lambda i: (i, 0)),
            # Weights / bias: constant block index -> stay resident in VMEM.
            pl.BlockSpec((X_LANES, O_LANES), lambda i: (0, 0)),
            pl.BlockSpec((X_LANES, O_LANES), lambda i: (0, 0)),
            pl.BlockSpec((1, O_LANES), lambda i: (0, 0)),
        ],
        out_specs=pl.BlockSpec((block_rows, O_LANES), lambda i: (i, 0)),
        compiler_params=pltpu.CompilerParams(
            # Rows are independent: parallel enables megacore sharding on v7x.
            dimension_semantics=("parallel",),
        ),
        cost_estimate=cost,
    )(x_packed, w_hi, w_lo, b_big)

    # Free reshape back to (M, 5); drop padding rows.
    return out_packed.reshape(m_pad, OUT_FEATURES)[:m]


class DummyModelPallas:
    """JAX/Pallas port of DummyModel: self.linear = nn.Linear(10, 5)."""

    def __init__(self, key):
        kw, kb = jax.random.split(key)
        # torch.nn.Linear default init: U[-1/sqrt(in), 1/sqrt(in)]; params f32.
        bound = 1.0 / (IN_FEATURES ** 0.5)
        self.weight = jax.random.uniform(
            kw, (OUT_FEATURES, IN_FEATURES), jnp.float32, -bound, bound
        )
        self.bias = jax.random.uniform(
            kb, (OUT_FEATURES,), jnp.float32, -bound, bound
        )

    def __call__(self, inputs, *, force_pallas=False):
        # TODO(synk): DummyModel feeds inputs['input_ids'] straight into the
        # Linear (no embedding), so it is consumed here as a dense float matrix.
        x = inputs["input_ids"]
        if force_pallas or x.shape[0] >= PALLAS_MIN_ROWS:
            return linear_pallas(x, self.weight, self.bias)
        # Small batch: a single fused XLA op beats a kernel launch; f32 precision.
        return (
            jnp.dot(x.astype(jnp.float32), self.weight.T,
                    precision=jax.lax.Precision.HIGHEST)
            + self.bias
        )


def _reference(x, weight, bias):
    # Exact f32 reference via explicit multiply-add (no matmul-precision
    # ambiguity on TPU).
    return jnp.sum(
        x[:, None, :].astype(jnp.float32) * weight[None, :, :], axis=-1
    ) + bias


if __name__ == "__main__":
    key = jax.random.PRNGKey(0)
    k_model, k_small, k_big = jax.random.split(key, 3)
    model = DummyModelPallas(k_model)

    # Small DummyModel-style batch, forced through the Pallas path (exercises
    # the M < 64 padding / single-block edge case).
    x_small = jax.random.normal(k_small, (8, IN_FEATURES), jnp.float32)
    out_small = jax.block_until_ready(
        model({"input_ids": x_small}, force_pallas=True)
    )
    ref_small = _reference(x_small, model.weight, model.bias)
    assert out_small.shape == (8, OUT_FEATURES)
    assert jnp.allclose(out_small, ref_small, atol=5e-4, rtol=5e-4), (
        float(jnp.max(jnp.abs(out_small - ref_small)))
    )

    # Multi-step grid (2048 rows -> 2 grid steps): pipelined + megacore split.
    x_big = jax.random.normal(k_big, (2048, IN_FEATURES), jnp.float32)
    out_big = jax.block_until_ready(
        linear_pallas(x_big, model.weight, model.bias)
    )
    ref_big = _reference(x_big, model.weight, model.bias)
    assert out_big.shape == (2048, OUT_FEATURES)
    assert jnp.allclose(out_big, ref_big, atol=5e-4, rtol=5e-4), (
        float(jnp.max(jnp.abs(out_big - ref_big)))
    )

    # Small-batch dispatch path (plain XLA fallback) still matches.
    out_fallback = jax.block_until_ready(model({"input_ids": x_small}))
    assert jnp.allclose(out_fallback, ref_small, atol=5e-4, rtol=5e-4)

    print("KERNEL_OK")
</pallas_src>

<mosaic_0001>
module attributes {stable_mosaic.version = 11 : i64} {
  func.func @_linear_kernel(%arg0: i32, %arg1: memref<1x640xf32, #tpu.memory_space<vmem>>, %arg2: memref<640x320xbf16, #tpu.memory_space<vmem>>, %arg3: memref<640x320xbf16, #tpu.memory_space<vmem>>, %arg4: memref<1x320xf32, #tpu.memory_space<vmem>>, %arg5: memref<1x320xf32, #tpu.memory_space<vmem>>) attributes {dimension_semantics = [#tpu.dimension_semantics<parallel>], iteration_bounds = array<i64: 1>, scalar_prefetch = 0 : i64, scratch_operands = 0 : i64, tpu.core_type = #tpu.core_type<tc>, window_params = [{transform_indices = @transform_0, window_bounds = array<i64: 1, 640>}, {pipeline_mode = #tpu.pipeline_mode<synchronous>, transform_indices = @transform_1, window_bounds = array<i64: 640, 320>}, {pipeline_mode = #tpu.pipeline_mode<synchronous>, transform_indices = @transform_2, window_bounds = array<i64: 640, 320>}, {pipeline_mode = #tpu.pipeline_mode<synchronous>, transform_indices = @transform_3, window_bounds = array<i64: 1, 320>}, {transform_indices = @transform_4, window_bounds = array<i64: 1, 320>}]} {
    %c0 = arith.constant 0 : index
    %c0_0 = arith.constant 0 : index
    %0 = vector.load %arg1[%c0, %c0_0] : memref<1x640xf32, #tpu.memory_space<vmem>>, vector<1x640xf32>
    %1 = arith.truncf %0 : vector<1x640xf32> to vector<1x640xbf16>
    %2 = arith.extf %1 : vector<1x640xbf16> to vector<1x640xf32>
    %3 = arith.subf %0, %2 : vector<1x640xf32>
    %4 = arith.truncf %3 : vector<1x640xf32> to vector<1x640xbf16>
    %c0_1 = arith.constant 0 : index
    %c0_2 = arith.constant 0 : index
    %5 = vector.load %arg2[%c0_1, %c0_2] : memref<640x320xbf16, #tpu.memory_space<vmem>>, vector<640x320xbf16>
    %cst = arith.constant dense<0.000000e+00> : vector<1x320xf32>
    %6 = tpu.matmul %1, %5, %cst {dimension_numbers = #tpu.dot_dimension_numbers<[1], [0], [0], [1], [0, 0, 1, 1], [], []>} : vector<1x640xbf16>, vector<640x320xbf16>, vector<1x320xf32> -> vector<1x320xf32>
    %cst_3 = arith.constant dense<0.000000e+00> : vector<1x320xf32>
    %7 = tpu.matmul %4, %5, %cst_3 {dimension_numbers = #tpu.dot_dimension_numbers<[1], [0], [0], [1], [0, 0, 1, 1], [], []>} : vector<1x640xbf16>, vector<640x320xbf16>, vector<1x320xf32> -> vector<1x320xf32>
    %8 = arith.addf %6, %7 : vector<1x320xf32>
    %c0_4 = arith.constant 0 : index
    %c0_5 = arith.constant 0 : index
    %9 = vector.load %arg3[%c0_4, %c0_5] : memref<640x320xbf16, #tpu.memory_space<vmem>>, vector<640x320xbf16>
    %cst_6 = arith.constant dense<0.000000e+00> : vector<1x320xf32>
    %10 = tpu.matmul %1, %9, %cst_6 {dimension_numbers = #tpu.dot_dimension_numbers<[1], [0], [0], [1], [0, 0, 1, 1], [], []>} : vector<1x640xbf16>, vector<640x320xbf16>, vector<1x320xf32> -> vector<1x320xf32>
    %11 = arith.addf %8, %10 : vector<1x320xf32>
    %c0_7 = arith.constant 0 : index
    %c0_8 = arith.constant 0 : index
    %12 = vector.load %arg4[%c0_7, %c0_8] : memref<1x320xf32, #tpu.memory_space<vmem>>, vector<1x320xf32>
    %13 = arith.addf %11, %12 : vector<1x320xf32>
    %c0_9 = arith.constant 0 : index
    %c0_10 = arith.constant 0 : index
    %14 = vector.load %arg5[%c0_9, %c0_10] : memref<1x320xf32, #tpu.memory_space<vmem>>, vector<1x320xf32>
    tpu.vector_store %arg5[%c0_9, %c0_10], %13 {strides = array<i32>} : memref<1x320xf32, #tpu.memory_space<vmem>>, vector<1x320xf32>,
    return
  }
  func.func @transform_0(%arg0: i32) -> (i32, i32) {
    %c0_i32 = arith.constant 0 : i32
    %c0_i32_0 = arith.constant 0 : i32
    return %arg0, %c0_i32 : i32, i32
  }
  func.func @transform_1(%arg0: i32) -> (i32, i32) {
    %c0_i32 = arith.constant 0 : i32
    %c0_i32_0 = arith.constant 0 : i32
    %c0_i32_1 = arith.constant 0 : i32
    return %c0_i32, %c0_i32_0 : i32, i32
  }
  func.func @transform_2(%arg0: i32) -> (i32, i32) {
    %c0_i32 = arith.constant 0 : i32
    %c0_i32_0 = arith.constant 0 : i32
    %c0_i32_1 = arith.constant 0 : i32
    return %c0_i32, %c0_i32_0 : i32, i32
  }
  func.func @transform_3(%arg0: i32) -> (i32, i32) {
    %c0_i32 = arith.constant 0 : i32
    %c0_i32_0 = arith.constant 0 : i32
    %c0_i32_1 = arith.constant 0 : i32
    return %c0_i32, %c0_i32_0 : i32, i32
  }
  func.func @transform_4(%arg0: i32) -> (i32, i32) {
    %c0_i32 = arith.constant 0 : i32
    %c0_i32_0 = arith.constant 0 : i32
    return %arg0, %c0_i32 : i32, i32
  }
}

</mosaic_0001>

<bundles_post_ra>
// kernel: tpu_custom_call.1
= control target key start
LH: loop header
LB: loop body
LE: loop exit
PB: predicated region body
PF: predicated region fallthrough
CT: control target
= control target key end

     0   :  { %v4744_v34 = vlaneseq  ;;  %v3387_v46 = vmov 1966171168   ;;  %vm3390_vm0 = vmmov 0   ;;  %s4739_s0 = inlined_call_operand.vmem [shape: f32[1,640], index: 0, kind: input, shape index: {}]   ;;  %s4740_s1 = inlined_call_operand.vmem [shape: bf16[640,320], index: 1, kind: input, shape index: {}]   ;;  %s4741_s2 = inlined_call_operand.vmem [shape: bf16[640,320], index: 2, kind: input, shape index: {}]   ;;  %s4742_s3 = inlined_call_operand.vmem [shape: f32[1,320], index: 3, kind: input, shape index: {}]   ;;  %s4743_s4 = inlined_call_operand.hbm [shape: f32[1,320], index: 4, kind: output, shape index: {}]  }
   0x1   :  { %v2995_v0 = vld [vmem:[%s4740_s1 + $0x4] ss:$12 sps:$4 sm:$0xff]   ;;  %v2999_v2 = vld [vmem:[%s4740_s1] ss:$12 sps:$4 sm:$0xff]   ;;  %v3001_v4 = vld [vmem:[%s4740_s1 + $0x1c] ss:$12 sps:$4 sm:$0xff]   ;;  %v64_v47 = vunpack.c.l.s4 %v3387_v46 }
   0x2   :  { %v2997_v1 = vld [vmem:[%s4740_s1 + $0x184] ss:$12 sps:$4 sm:$0xff]   ;;  %933 = vmatprep.subr.bf16.mxu0 %v2995_v0  ;;  %v3000_v3 = vld [vmem:[%s4740_s1 + $0x180] ss:$12 sps:$4 sm:$0xff]   ;;  %v3003_v5 = vld [vmem:[%s4740_s1 + $0x19c] ss:$12 sps:$4 sm:$0xff]  }
   0x3   :  { %974 = vmatprep.subr.bf16.mxu1 %v2997_v1  ;;  %934 = vmatpush1.bf16.msra.mxu0 %v2999_v2  ;;  %v3005_v6 = vld [vmem:[%s4740_s1 + $0x18] ss:$12 sps:$4 sm:$0xff]   ;;  %v3007_v8 = vld [vmem:[%s4740_s1 + $0x34] ss:$12 sps:$4 sm:$0xff]   ;;  %v3011_v10 = vld [vmem:[%s4740_s1 + $0x30] ss:$12 sps:$4 sm:$0xff]   ;;  %v65_v57 = vunpack.c.0.s8 %v64_v47 }
   0x4   :  { %975 = vmatpush1.bf16.msra.mxu1 %v3000_v3  ;;  %935 = vmatprep.subr.bf16.mxu0 %v3001_v4  ;;  %v3006_v7 = vld [vmem:[%s4740_s1 + $0x198] ss:$12 sps:$4 sm:$0xff]   ;;  %v3009_v9 = vld [vmem:[%s4740_s1 + $0x1b4] ss:$12 sps:$4 sm:$0xff]   ;;  %v3012_v11 = vld [vmem:[%s4740_s1 + $0x1b0] ss:$12 sps:$4 sm:$0xff]  }
   0x5   :  { %976 = vmatprep.subr.bf16.mxu1 %v3003_v5  ;;  %v3013_v12 = vld [vmem:[%s4740_s1 + $0x4c] ss:$12 sps:$4 sm:$0xff]   ;;  %v3017_v14 = vld [vmem:[%s4740_s1 + $0x48] ss:$12 sps:$4 sm:$0xff]   ;;  %v3019_v16 = vld [vmem:[%s4740_s1 + $0x64] ss:$12 sps:$4 sm:$0xff]  }
   0x6   :  { %v3015_v13 = vld [vmem:[%s4740_s1 + $0x1cc] ss:$12 sps:$4 sm:$0xff]   ;;  %v3018_v15 = vld [vmem:[%s4740_s1 + $0x1c8] ss:$12 sps:$4 sm:$0xff]   ;;  %v3021_v17 = vld [vmem:[%s4740_s1 + $0x1e4] ss:$12 sps:$4 sm:$0xff]  }
   0x7   :  { %936 = vmatpush1.bf16.msra.mxu0 %v3005_v6  ;;  %v3023_v18 = vld [vmem:[%s4740_s1 + $0x60] ss:$12 sps:$4 sm:$0xff]   ;;  %v3025_v20 = vld [vmem:[%s4740_s1 + $0x7c] ss:$12 sps:$4 sm:$0xff]   ;;  %v3029_v22 = vld [vmem:[%s4740_s1 + $0x78] ss:$12 sps:$4 sm:$0xff]  }
   0x8   :  { %977 = vmatpush1.bf16.msra.mxu1 %v3006_v7  ;;  %937 = vmatprep.subr.bf16.mxu0 %v3007_v8  ;;  %v3024_v19 = vld [vmem:[%s4740_s1 + $0x1e0] ss:$12 sps:$4 sm:$0xff]   ;;  %v3027_v21 = vld [vmem:[%s4740_s1 + $0x1fc] ss:$12 sps:$4 sm:$0xff]   ;;  %v3030_v23 = vld [vmem:[%s4740_s1 + $0x1f8] ss:$12 sps:$4 sm:$0xff]  }
   0x9   :  { %978 = vmatprep.subr.bf16.mxu1 %v3009_v9  ;;  %v3031_v24 = vld [vmem:[%s4740_s1 + $0x94] ss:$12 sps:$4 sm:$0xff]   ;;  %v3035_v26 = vld [vmem:[%s4740_s1 + $0x90] ss:$12 sps:$4 sm:$0xff]   ;;  %v3037_v28 = vld [vmem:[%s4740_s1 + $0xac] ss:$12 sps:$4 sm:$0xff]  }
   0xa   :  { %v3033_v25 = vld [vmem:[%s4740_s1 + $0x214] ss:$12 sps:$4 sm:$0xff]   ;;  %v3036_v27 = vld [vmem:[%s4740_s1 + $0x210] ss:$12 sps:$4 sm:$0xff]   ;;  %v3039_v29 = vld [vmem:[%s4740_s1 + $0x22c] ss:$12 sps:$4 sm:$0xff]  }
   0xb   :  { %938 = vmatpush1.bf16.msra.mxu0 %v3011_v10  ;;  %v3041_v30 = vld [vmem:[%s4740_s1 + $0xa8] ss:$12 sps:$4 sm:$0xff]   ;;  %v3043_v32 = vld [vmem:[%s4740_s1 + $0xc4] ss:$12 sps:$4 sm:$0xff]   ;;  %v3047_v35 = vld [vmem:[%s4740_s1 + $0xc0] ss:$12 sps:$4 sm:$0xff]  }
   0xc   :  { %979 = vmatpush1.bf16.msra.mxu1 %v3012_v11  ;;  %939 = vmatprep.subr.bf16.mxu0 %v3013_v12  ;;  %v3042_v31 = vld [vmem:[%s4740_s1 + $0x228] ss:$12 sps:$4 sm:$0xff]   ;;  %v3045_v33 = vld [vmem:[%s4740_s1 + $0x244] ss:$12 sps:$4 sm:$0xff]   ;;  %v3048_v36 = vld [vmem:[%s4740_s1 + $0x240] ss:$12 sps:$4 sm:$0xff]  }
   0xd   :  { %980 = vmatprep.subr.bf16.mxu1 %v3015_v13  ;;  %v3049_v37 = vld [vmem:[%s4740_s1 + $0xdc] ss:$12 sps:$4 sm:$0xff]   ;;  %v3532_v39 = vshrl.u32 %v4744_v34, 7  ;;  %v3053_v40 = vld [vmem:[%s4740_s1 + $0xd8] ss:$12 sps:$4 sm:$0xff]  }
   0xe   :  { %v3051_v38 = vld [vmem:[%s4740_s1 + $0x25c] ss:$12 sps:$4 sm:$0xff]   ;;  %v3054_v41 = vld [vmem:[%s4740_s1 + $0x258] ss:$12 sps:$4 sm:$0xff]   ;;  %v3055_v42 = vld [vmem:[%s4740_s1 + $0xf4] ss:$12 sps:$4 sm:$0xff]  }
   0xf   :  { %940 = vmatpush1.bf16.msra.mxu0 %v3017_v14  ;;  %v3057_v43 = vld [vmem:[%s4740_s1 + $0x274] ss:$12 sps:$4 sm:$0xff]   ;;  %v3547_v44 = vsub.s32 0, %v3532_v39  ;;  %v3550_v45 = vsub.s32 1, %v3532_v39  ;;  %v3059_v48 = vld [vmem:[%s4740_s1 + $0xf0] ss:$12 sps:$4 sm:$0xff]   ;;  %v3619_v12 = vsub.s32 %v65_v57, %v3532_v39 }
  0x10   :  { %981 = vmatpush1.bf16.msra.mxu1 %v3018_v15  ;;  %941 = vmatprep.subr.bf16.mxu0 %v3019_v16  ;;  %v3060_v49 = vld [vmem:[%s4740_s1 + $0x270] ss:$12 sps:$4 sm:$0xff]   ;;  %v3559_v50 = vsub.s32 2, %v3532_v39  ;;  %v35_v51 = vsub.s32 3, %v3532_v39  ;;  %v3061_v52 = vld [vmem:[%s4740_s1 + $0x10c] ss:$12 sps:$4 sm:$0xff]  }
  0x11   :  { %982 = vmatprep.subr.bf16.mxu1 %v3021_v17  ;;  %4774 = vst [vmem:[#allocation5_spill] sm:$0xff] %v3547_v44  ;;  %4775 = vst [vmem:[#allocation6_spill] sm:$0xff] %v3550_v45  ;;  %v39_v53 = vsub.s32 4, %v3532_v39  ;;  %v3063_v54 = vld [vmem:[%s4740_s1 + $0x28c] ss:$12 sps:$4 sm:$0xff]  }
  0x12   :  { %4776 = vst [vmem:[#allocation7_spill] sm:$0xff] %v3559_v50  ;;  %v3065_v55 = vld [vmem:[%s4740_s1 + $0x108] ss:$12 sps:$4 sm:$0xff]   ;;  %v19_v56 = vld [vmem:[%s4739_s0] sm:$0x1f]  ;;  %4778 = vst [vmem:[#allocation9_spill] sm:$0xff] %v3619_v12 }
  0x13   :  { %942 = vmatpush1.bf16.msra.mxu0 %v3023_v18  ;;  %v3066_v58 = vld [vmem:[%s4740_s1 + $0x288] ss:$12 sps:$4 sm:$0xff]   ;;  %v24_v59 = vrot.slane %v19_v56, %v3547_v44  ;;  %v28_v60 = vrot.slane %v19_v56, %v3550_v45  ;;  %v32_v61 = vrot.slane %v19_v56, %v3559_v50  ;;  %v36_v62 = vrot.slane %v19_v56, %v35_v51  ;;  %v3586_v63 = vld [vmem:[%s4740_s1 + $0x124] ss:$12 sps:$4 sm:$0xff]   ;;  %v3608_v7 = vld [vmem:[%s4740_s1 + $0x120] ss:$12 sps:$4 sm:$0xff]  }
  0x14   :  { %983 = vmatpush1.bf16.msra.mxu1 %v3024_v19  ;;  %943 = vmatprep.subr.bf16.mxu0 %v3025_v20  ;;  %v40_v0 = vrot.slane %v19_v56, %v39_v53  ;;  %v3593_v1 = vld [vmem:[%s4740_s1 + $0x2a4] ss:$12 sps:$4 sm:$0xff]   ;;  %v3613_v8 = vld [vmem:[%s4740_s1 + $0x2a0] ss:$12 sps:$4 sm:$0xff]   ;;  %v3624_v13 = vld [vmem:[%s4740_s1 + $0x13c] ss:$12 sps:$4 sm:$0xff]  }
  0x15   :  { %984 = vmatprep.subr.bf16.mxu1 %v3027_v21  ;;  %v3595_v2 = vpack.c.bf16 %v24_v59, %v24_v59  ;;  %v3597_v3 = vpack.c.bf16 %v28_v60, %v28_v60  ;;  %v3599_v4 = vpack.c.bf16 %v32_v61, %v32_v61  ;;  %v3601_v5 = vpack.c.bf16 %v36_v62, %v36_v62  ;;  %v3633_v16 = vld [vmem:[%s4740_s1 + $0x2bc] ss:$12 sps:$4 sm:$0xff]   ;;  %v3638_v18 = vld [vmem:[%s4740_s1 + $0x138] ss:$12 sps:$4 sm:$0xff]   ;;  %v3726_v47 = vld [vmem:[%s4740_s1 + $0x300] ss:$12 sps:$4 sm:$0xff]  }
  0x16   :  { %v3603_v6 = vpack.c.bf16 %v40_v0, %v40_v0  ;;  %v3644_v21 = vld [vmem:[%s4740_s1 + $0x2b8] ss:$12 sps:$4 sm:$0xff]   ;;  %v3771_v59 = vld [vmem:[%s4740_s1 + $0x334] ss:$12 sps:$4 sm:$0xff]   ;;  %v3783_v61 = vld [vmem:[%s4740_s1 + $0x330] ss:$12 sps:$4 sm:$0xff]  }
  0x17   :  { %944 = vmatpush1.bf16.msra.mxu0 %v3029_v22  ;;  %v51_v9 = vunpack.c.l.bf16 %v3595_v2  ;;  %v52_v10 = vunpack.c.l.bf16 %v3597_v3  ;;  %v53_v11 = vunpack.c.l.bf16 %v3599_v4  ;;  %v54_v14 = vunpack.c.l.bf16 %v3601_v5  ;;  %v3759_v57 = vld [vmem:[%s4740_s1 + $0x318] ss:$12 sps:$4 sm:$0xff]   ;;  %v3926_v39 = vld [vmem:[%s4740_s1 + $0x188] ss:$12 sps:$4 sm:$0xff]  }
  0x18   :  { %985 = vmatpush1.bf16.msra.mxu1 %v3030_v23  ;;  %945 = vmatprep.subr.bf16.mxu0 %v3031_v24  ;;  %4777 = vst [vmem:[#allocation8_spill] sm:$0xff] %v3603_v6  ;;  %v55_v15 = vunpack.c.l.bf16 %v3603_v6  ;;  %v3652_v23 = vld [vmem:[%s4740_s1 + $0x154] ss:$12 sps:$4 sm:$0xff]   ;;  %v3778_v60 = vld [vmem:[%s4740_s1 + $0xf8] ss:$12 sps:$4 sm:$0xff]   ;;  %v4745_v62 = vmov 0  }
  0x19   :  { %986 = vmatprep.subr.bf16.mxu1 %v3033_v25  ;;  %v61_v17 = vcombine.low %v51_v9, %v52_v10  ;;  %v62_v19 = vcombine.low %v53_v11, %v54_v14  ;;  %v3660_v25 = vld [vmem:[%s4740_s1 + $0x2d4] ss:$12 sps:$4 sm:$0xff]   ;;  %v3789_v0 = vld [vmem:[%s4740_s1 + $0x38] ss:$12 sps:$4 sm:$0xff]   ;;  %v3803_v10 = vld [vmem:[%s4740_s1 + $0x110] ss:$12 sps:$4 sm:$0xff]  }
  0x1a   :  { %v83_v20 = vrot.slane %v55_v15, %v3619_v12  ;;  %v3796_v9 = vld [vmem:[%s4740_s1 + $0x34c] ss:$12 sps:$4 sm:$0xff]   ;;  %v3808_v11 = vld [vmem:[%s4740_s1 + $0x348] ss:$12 sps:$4 sm:$0xff]   ;;  %v3813_v14 = vld [vmem:[%s4740_s1 + $0x50] ss:$12 sps:$4 sm:$0xff]  }
  0x1b   :  { %946 = vmatpush1.bf16.msra.mxu0 %v3035_v26  ;;  %v69_v22 = vrot.slane %v61_v17, %v3619_v12  ;;  %v76_v24 = vrot.slane %v62_v19, %v3619_v12  ;;  %v3820_v15 = vld [vmem:[%s4740_s1 + $0x364] ss:$12 sps:$4 sm:$0xff]   ;;  %v3827_v17 = vld [vmem:[%s4740_s1 + $0x128] ss:$12 sps:$4 sm:$0xff]   ;;  %v3832_v19 = vld [vmem:[%s4740_s1 + $0x360] ss:$12 sps:$4 sm:$0xff]  }
  0x1c   :  { %987 = vmatpush1.bf16.msra.mxu1 %v3036_v27  ;;  %947 = vmatprep.subr.bf16.mxu0 %v3037_v28  ;;  %v98_v27 = vrot.slane %v83_v20, %v3619_v12  ;;  %v3666_v28 = vld [vmem:[%s4740_s1 + $0x150] ss:$12 sps:$4 sm:$0xff]   ;;  %v3837_v20 = vld [vmem:[%s4740_s1 + $0x68] ss:$12 sps:$4 sm:$0xff]   ;;  %v3959_v6 = vld [vmem:[%s4740_s1 + $0x278] ss:$12 sps:$4 sm:$0xff]  }
  0x1d   :  { %988 = vmatprep.subr.bf16.mxu1 %v3039_v29  ;;  %v84_v26 = vcombine.low %v69_v22, %v76_v24  ;;  %v3673_v29 = vld [vmem:[%s4740_s1 + $0x2d0] ss:$12 sps:$4 sm:$0xff]   ;;  %v3851_v24 = vld [vmem:[%s4740_s1 + $0x140] ss:$12 sps:$4 sm:$0xff]   ;;  %4784 = vst [vmem:[#allocation15_spill] sm:$0xff] %v3959_v6 }
  0x1e   :  { %v3844_v22 = vld [vmem:[%s4740_s1 + $0x37c] ss:$12 sps:$4 sm:$0xff]  }
  0x1f   :  { %948 = vmatpush1.bf16.msra.mxu0 %v3041_v30  ;;  %v91_v30 = vrot.slane %v84_v26, %v3619_v12  ;;  %v3856_v26 = vld [vmem:[%s4740_s1 + $0x378] ss:$12 sps:$4 sm:$0xff]   ;;  %v3921_v12 = vld [vmem:[%s4740_s1 + $0x248] ss:$12 sps:$4 sm:$0xff]  }
  0x20   :  { %989 = vmatpush1.bf16.msra.mxu1 %v3042_v31  ;;  %949 = vmatprep.subr.bf16.mxu0 %v3043_v32  ;;  %v3681_v31 = vld [vmem:[%s4740_s1 + $0x16c] ss:$12 sps:$4 sm:$0xff]   ;;  %4779 = vst [vmem:[#allocation10_spill] sm:$0xff] %v3921_v12 }
  0x21   :  { %990 = vmatprep.subr.bf16.mxu1 %v3045_v33  ;;  %v3686_v32 = vld [vmem:[%s4740_s1 + $0x2ec] ss:$12 sps:$4 sm:$0xff]   ;;  %v99_v33 = vcombine.low %v91_v30, %v98_v27  ;;  %v3868_v30 = vld [vmem:[%s4740_s1 + $0x394] ss:$12 sps:$4 sm:$0xff]  }
  0x22   :  { %v3861_v27 = vld [vmem:[%s4740_s1 + $0x80] ss:$12 sps:$4 sm:$0xff]  }
  0x23   :  { %950 = vmatpush1.bf16.msra.mxu0 %v3047_v35  ;;  %v3691_v35 = vld [vmem:[%s4740_s1 + $0x168] ss:$12 sps:$4 sm:$0xff]  }
  0x24   :  { %991 = vmatpush1.bf16.msra.mxu1 %v3048_v36  ;;  %951 = vmatprep.subr.bf16.mxu0 %v3049_v37  ;;  %v3698_v36 = vld [vmem:[%s4740_s1 + $0x2e8] ss:$12 sps:$4 sm:$0xff]   ;;  %v3700_v37 = vsub.f32 %v19_v56, %v99_v33  ;;  %v3751_v56 = vld [vmem:[%s4740_s1 + $0xe0] ss:$12 sps:$4 sm:$0xff]   ;;  %v3875_v33 = vld [vmem:[%s4740_s1 + $0x158] ss:$12 sps:$4 sm:$0xff]  }
  0x25   :  { %992 = vmatprep.subr.bf16.mxu1 %v3051_v38  ;;  %v3705_v38 = vld [vmem:[%s4740_s1 + $0x304] ss:$12 sps:$4 sm:$0xff]  }
  0x26   :  { %v114_v46 = vrot.slane %v3700_v37, %v3559_v50  ;;  %v122_v34 = vrot.slane %v3700_v37, %v39_v53  ;;  %v3931_v53 = vld [vmem:[%s4740_s1 + $0x308] ss:$12 sps:$4 sm:$0xff]   ;;  %v3938_v50 = vld [vmem:[%s4740_s1 + $0x260] ss:$12 sps:$4 sm:$0xff]  }
  0x27   :  { %952 = vmatpush1.bf16.msra.mxu0 %v3053_v40  ;;  %v3712_v40 = vld [vmem:[%s4740_s1 + $0xc8] ss:$12 sps:$4 sm:$0xff]   ;;  %4780 = vst [vmem:[#allocation11_spill] sm:$0xff] %v3931_v53  ;;  %4781 = vst [vmem:[#allocation12_spill] sm:$0xff] %v3938_v50 }
  0x28   :  { %993 = vmatpush1.bf16.msra.mxu1 %v3054_v41  ;;  %953 = vmatprep.subr.bf16.mxu0 %v3055_v42  ;;  %v110_v41 = vrot.slane %v3700_v37, %v3550_v45  ;;  %v118_v42 = vrot.slane %v3700_v37, %v35_v51  ;;  %v4771_v45 = vmov 0.0  }
  0x29   :  { %994 = vmatprep.subr.bf16.mxu1 %v3057_v43  ;;  %v106_v43 = vrot.slane %v3700_v37, %v3547_v44  ;;  %v3933_v37 = vpack.c.bf16 %v122_v34, %v122_v34  ;;  %v3947_v44 = vld [vmem:[%s4740_s1 + $0x1a0] ss:$12 sps:$4 sm:$0xff]  }
  0x2a   :  { %v3735_v51 = vpack.c.bf16 %v118_v42, %v118_v42  ;;  %v3885_v42 = vld [vmem:[%s4740_s1 + $0x98] ss:$12 sps:$4 sm:$0xff]   ;;  %4782 = vst [vmem:[#allocation13_spill] sm:$0xff] %v3947_v44  ;;  %v3952_v34 = vld [vmem:[%s4740_s1 + $0x320] ss:$12 sps:$4 sm:$0xff]  }
  0x2b   :  { %954 = vmatpush1.bf16.msra.mxu0 %v3059_v48  ;;  %v3731_v48 = vld [vmem:[%s4740_s1 + $0x8] ss:$12 sps:$4 sm:$0xff]   ;;  %4783 = vst [vmem:[#allocation14_spill] sm:$0xff] %v3952_v34 }
  0x2c   :  { %995 = vmatpush1.bf16.msra.mxu1 %v3060_v49  ;;  %955 = vmatprep.subr.bf16.mxu0 %v3061_v52  ;;  %v129_v49 = vpack.c.bf16 %v110_v41, %v110_v41  ;;  %v3737_v52 = vpack.c.bf16 %v106_v43, %v106_v43  ;;  %v3880_v41 = vld [vmem:[%s4740_s1 + $0x390] ss:$12 sps:$4 sm:$0xff]   ;;  %v3892_v43 = vld [vmem:[%s4740_s1 + $0x3ac] ss:$12 sps:$4 sm:$0xff]  }
  0x2d   :  { %996 = vmatprep.subr.bf16.mxu1 %v3063_v54  ;;  %v3742_v54 = vld [vmem:[%s4740_s1 + $0x31c] ss:$12 sps:$4 sm:$0xff]   ;;  %1006 = vmatprep.mubr.bf16.mxu1 %v3735_v51 }
  0x2e   :  { %965 = vmatprep.mubr.bf16.mxu0 %v129_v49 }
  0x2f   :  { %956 = vmatpush1.bf16.msra.mxu0 %v3065_v55  ;;  %v3744_v55 = vpack.c.bf16 %v114_v46, %v114_v46  ;;  %v3899_v46 = vld [vmem:[%s4740_s1 + $0x170] ss:$12 sps:$4 sm:$0xff]  }
  0x30   :  { %997 = vmatpush1.bf16.msra.mxu1 %v3066_v58  ;;  %957 = vmatprep.subr.bf16.mxu0 %v3586_v63  ;;  %v3764_v58 = vld [vmem:[%s4740_s1 + $0x20] ss:$12 sps:$4 sm:$0xff]  }
  0x31   :  { %998 = vmatprep.subr.bf16.mxu1 %v3593_v1 }
  0x33   :  { %958 = vmatpush1.bf16.msra.mxu0 %v3608_v7 }
  0x34   :  { %999 = vmatpush1.bf16.msra.mxu1 %v3613_v8  ;;  %959 = vmatprep.subr.bf16.mxu0 %v3624_v13 }
  0x35   :  { %1000 = vmatprep.subr.bf16.mxu1 %v3633_v16 }
  0x37   :  { %960 = vmatpush1.bf16.msra.mxu0 %v3638_v18 }
  0x38   :  { %1001 = vmatpush1.bf16.msra.mxu1 %v3644_v21  ;;  %961 = vmatprep.subr.bf16.mxu0 %v3652_v23 }
  0x39   :  { %1002 = vmatprep.subr.bf16.mxu1 %v3660_v25 }
  0x3b   :  { %962 = vmatpush1.bf16.msra.mxu0 %v3666_v28 }
  0x3c   :  { %1003 = vmatpush1.bf16.msra.mxu1 %v3673_v29  ;;  %963 = vmatprep.subr.bf16.mxu0 %v3681_v31 }
  0x3d   :  { %1004 = vmatprep.subr.bf16.mxu1 %v3686_v32 }
  0x3f   :  { %964 = vmatpush1.bf16.msra.mxu0 %v3691_v35 }
  0x40   :  { %1005 = vmatpush1.bf16.msra.mxu1 %v3698_v36  ;;  %1015 = vmatprep.subr.bf16.mxu0 %v3705_v38 }
  0x41   :  { %2771 = vmatprep.subr.bf16.mxu1 %v3712_v40 }
  0x42   :  { %966 = vmatmul.mubr.bf16.vlgmr.msra.gmra.mrb[0].mxu0 %v3737_v52 }
  0x43   :  { %1007 = vmatmul.mubr.bf16.vlgmr.msra.gmra.mrb[0].mxu1 %v3744_v55  ;;  %1016 = vmatpush1.bf16.msra.mxu0 %v3726_v47 }
  0x44   :  { %2772 = vmatpush3.bf16.msra.mxu1 %v3731_v48  ;;  %1017 = vmatprep.subr.bf16.mxu0 %v3742_v54 }
  0x45   :  { %2773 = vmatprep.subr.bf16.mxu1 %v3751_v56  ;;  %1047 = vmatprep.mubr.bf16.mxu0 %v4745_v62  ;;  %v3914_v62 = vld [vmem:[%s4740_s1 + $0xb0] ss:$12 sps:$4 sm:$0xff]  }
  0x46   :  { %1088 = vmatprep.mubr.bf16.mxu1 %v129_v49  ;;  %v3904_v49 = vld [vmem:[%s4740_s1 + $0x3a8] ss:$12 sps:$4 sm:$0xff]  }
  0x47   :  { %1018 = vmatpush1.bf16.msra.mxu0 %v3759_v57 }
  0x48   :  { %2774 = vmatpush3.bf16.msra.mxu1 %v3764_v58  ;;  %1019 = vmatprep.subr.bf16.mxu0 %v3771_v59 }
  0x49   :  { %2775 = vmatprep.subr.bf16.mxu1 %v3778_v60 }
  0x4b   :  { %1020 = vmatpush1.bf16.msra.mxu0 %v3783_v61 }
  0x4c   :  { %2776 = vmatpush3.bf16.msra.mxu1 %v3789_v0  ;;  %1021 = vmatprep.subr.bf16.mxu0 %v3796_v9 }
  0x4d   :  { %2777 = vmatprep.subr.bf16.mxu1 %v3803_v10 }
  0x4f   :  { %1022 = vmatpush1.bf16.msra.mxu0 %v3808_v11 }
  0x50   :  { %2778 = vmatpush3.bf16.msra.mxu1 %v3813_v14  ;;  %1023 = vmatprep.subr.bf16.mxu0 %v3820_v15 }
  0x51   :  { %2779 = vmatprep.subr.bf16.mxu1 %v3827_v17 }
  0x53   :  { %1024 = vmatpush1.bf16.msra.mxu0 %v3832_v19 }
  0x54   :  { %2780 = vmatpush3.bf16.msra.mxu1 %v3837_v20  ;;  %1025 = vmatprep.subr.bf16.mxu0 %v3844_v22 }
  0x55   :  { %2781 = vmatprep.subr.bf16.mxu1 %v3851_v24 }
  0x57   :  { %1026 = vmatpush1.bf16.msra.mxu0 %v3856_v26 }
  0x58   :  { %2782 = vmatpush3.bf16.msra.mxu1 %v3861_v27  ;;  %1027 = vmatprep.subr.bf16.mxu0 %v3868_v30 }
  0x59   :  { %2783 = vmatprep.subr.bf16.mxu1 %v3875_v33 }
  0x5b   :  { %1028 = vmatpush1.bf16.msra.mxu0 %v3880_v41 }
  0x5c   :  { %2784 = vmatpush3.bf16.msra.mxu1 %v3885_v42  ;;  %1029 = vmatprep.subr.bf16.mxu0 %v3892_v43 }
  0x5d   :  { %2785 = vmatprep.subr.bf16.mxu1 %v3899_v46 }
  0x5f   :  { %1030 = vmatpush1.bf16.msra.mxu0 %v3904_v49 }
  0x60   :  { %2786 = vmatpush3.bf16.msra.mxu1 %v3914_v62  ;;  %2793 = vmatprep.subr.bf16.mxu0 %v3921_v12  ;;  %v3968_v12 = vld [vmem:[%s4740_s1 + $0x1b8] ss:$12 sps:$4 sm:$0xff]  }
  0x61   :  { %2930 = vmatprep.subr.bf16.mxu1 %v4771_v45  ;;  %4785 = vst [vmem:[#allocation16_spill] sm:$0xff] %v3968_v12 }
  0x62   :  { %1048 = vmatmul.mubr.bf16.vlgmr.msra.gmra.mrb[4].mxu0 %v3933_v37 }
  0x63   :  { %1089 = vmatmul.mubr.bf16.vlgmr.msra.gmra.mrb[4].mxu1 %v3737_v52  ;;  %2794 = vmatpush3.bf16.msra.mxu0 %v3926_v39  ;;  %v3973_v52 = vld [vmem:[%s4740_s1 + $0x338] ss:$12 sps:$4 sm:$0xff]  }
  0x64   :  { %2931 = vmatpush3.bf16.msra.mxu1 %v3931_v53  ;;  %2795 = vmatprep.subr.bf16.mxu0 %v3938_v50  ;;  %4786 = vst [vmem:[#allocation17_spill] sm:$0xff] %v3973_v52  ;;  %v3981_v50 = vld [vmem:[%s4740_s1 + $0x290] ss:$12 sps:$4 sm:$0xff]  }
  0x65   :  { %2932 = vmatprep.subr.bf16.mxu1 %v4771_v45  ;;  %1128 = vmatprep.mubr.bf16.mxu0 %v3735_v51  ;;  %4787 = vst [vmem:[#allocation18_spill] sm:$0xff] %v3981_v50  ;;  %v3990_v51 = vld [vmem:[%s4740_s1 + $0x1d0] ss:$12 sps:$4 sm:$0xff]  }
  0x66   :  { %2946 = vmatprep.mubr.msk.bf16.mxu1 %vm3390_vm0, %v4771_v45  ;;  %4788 = vst [vmem:[#allocation19_spill] sm:$0xff] %v3990_v51  ;;  %v3995_v53 = vld [vmem:[%s4740_s1 + $0x350] ss:$12 sps:$4 sm:$0xff]  }
  0x67   :  { %2796 = vmatpush3.bf16.msra.mxu0 %v3947_v44  ;;  %4789 = vst [vmem:[#allocation20_spill] sm:$0xff] %v3995_v53  ;;  %v4000_v44 = vld [vmem:[%s4740_s1 + $0x2a8] ss:$12 sps:$4 sm:$0xff]  }
  0x68   :  { %2933 = vmatpush3.bf16.msra.mxu1 %v3952_v34  ;;  %2797 = vmatprep.subr.bf16.mxu0 %v3959_v6  ;;  %4790 = vst [vmem:[#allocation21_spill] sm:$0xff] %v4000_v44  ;;  %v4009_v6 = vld [vmem:[%s4740_s1 + $0x1e8] ss:$12 sps:$4 sm:$0xff]  }
  0x69   :  { %2934 = vmatprep.subr.bf16.mxu1 %v4771_v45  ;;  %4791 = vst [vmem:[#allocation22_spill] sm:$0xff] %v4009_v6  ;;  %v4014_v34 = vld [vmem:[%s4740_s1 + $0x368] ss:$12 sps:$4 sm:$0xff]  }
  0x6a   :  { %4792 = vst [vmem:[#allocation23_spill] sm:$0xff] %v4014_v34 }
  0x6b   :  { %2798 = vmatpush3.bf16.msra.mxu0 %v3968_v12  ;;  %v4019_v12 = vld [vmem:[%s4740_s1 + $0x2c0] ss:$12 sps:$4 sm:$0xff]  }
  0x6c   :  { %2935 = vmatpush3.bf16.msra.mxu1 %v3973_v52  ;;  %2799 = vmatprep.subr.bf16.mxu0 %v3981_v50  ;;  %4793 = vst [vmem:[#allocation24_spill] sm:$0xff] %v4019_v12  ;;  %v4028_v50 = vld [vmem:[%s4740_s1 + $0x200] ss:$12 sps:$4 sm:$0xff]  }
  0x6d   :  { %2936 = vmatprep.subr.bf16.mxu1 %v4771_v45  ;;  %v4033_v52 = vld [vmem:[%s4740_s1 + $0x380] ss:$12 sps:$4 sm:$0xff]  }
  0x6e   :  { %4794 = vst [vmem:[#allocation25_spill] sm:$0xff] %v4033_v52 }
  0x6f   :  { %2800 = vmatpush3.bf16.msra.mxu0 %v3990_v51  ;;  %v4038_v51 = vld [vmem:[%s4740_s1 + $0x2d8] ss:$12 sps:$4 sm:$0xff]  }
  0x70   :  { %2937 = vmatpush3.bf16.msra.mxu1 %v3995_v53  ;;  %2801 = vmatprep.subr.bf16.mxu0 %v4000_v44  ;;  %4795 = vst [vmem:[#allocation26_spill] sm:$0xff] %v4038_v51  ;;  %v4047_v44 = vld [vmem:[%s4740_s1 + $0x218] ss:$12 sps:$4 sm:$0xff]  }
  0x71   :  { %2938 = vmatprep.subr.bf16.mxu1 %v4771_v45  ;;  %v4052_v53 = vld [vmem:[%s4740_s1 + $0x398] ss:$12 sps:$4 sm:$0xff]  }
  0x73   :  { %2802 = vmatpush3.bf16.msra.mxu0 %v4009_v6  ;;  %v4057_v6 = vld [vmem:[%s4740_s1 + $0x2f0] ss:$12 sps:$4 sm:$0xff]  }
  0x74   :  { %2939 = vmatpush3.bf16.msra.mxu1 %v4014_v34  ;;  %2803 = vmatprep.subr.bf16.mxu0 %v4019_v12  ;;  %v4066_v12 = vld [vmem:[%s4740_s1 + $0x230] ss:$12 sps:$4 sm:$0xff]  }
  0x75   :  { %2940 = vmatprep.subr.bf16.mxu1 %v4771_v45  ;;  %v4071_v34 = vld [vmem:[%s4740_s1 + $0x3b0] ss:$12 sps:$4 sm:$0xff]  }
  0x76   :  { %4796 = vst [vmem:[#allocation27_spill] sm:$0xff] %v4071_v34 }
  0x77   :  { %2804 = vmatpush3.bf16.msra.mxu0 %v4028_v50 }
  0x78   :  { %2941 = vmatpush3.bf16.msra.mxu1 %v4033_v52  ;;  %2805 = vmatprep.subr.bf16.mxu0 %v4038_v51  ;;  %v3315_v51 = vld [vmem:[%s4740_s1 + $0x4] ss:$12 sps:$4 sm:$0xff]  }
  0x79   :  { %2942 = vmatprep.subr.bf16.mxu1 %v4771_v45  ;;  %v3316_v52 = vld [vmem:[%s4740_s1 + $0x184] ss:$12 sps:$4 sm:$0xff]  }
  0x7b   :  { %2806 = vmatpush3.bf16.msra.mxu0 %v4047_v44 }
  0x7c   :  { %2943 = vmatpush3.bf16.msra.mxu1 %v4052_v53  ;;  %2807 = vmatprep.subr.bf16.mxu0 %v4057_v6 }
  0x7d   :  { %2944 = vmatprep.subr.bf16.mxu1 %v4771_v45  ;;  %v3317_v45 = vld [vmem:[%s4740_s1] ss:$12 sps:$4 sm:$0xff]  }
  0x7f   :  { %2808 = vmatpush3.bf16.msra.mxu0 %v4066_v12 }
  0x80   :  { %2945 = vmatpush3.bf16.msra.mxu1 %v4071_v34  ;;  %1176 = vmatprep.subr.bf16.mxu0 %v3315_v51  ;;  %v3318_v34 = vld [vmem:[%s4740_s1 + $0x180] ss:$12 sps:$4 sm:$0xff]   ;;  %v3319_v51 = vld [vmem:[%s4740_s1 + $0x1c] ss:$12 sps:$4 sm:$0xff]  }
  0x81   :  { %1217 = vmatprep.subr.bf16.mxu1 %v3316_v52  ;;  %v3324_v52 = vld [vmem:[%s4740_s1 + $0x1b4] ss:$12 sps:$4 sm:$0xff]  }
  0x82   :  { %1129 = vmatmul.mubr.bf16.vlgmr.msra.gmra.mrb[8].mxu0 %v3744_v55  ;;  %v3320_v55 = vld [vmem:[%s4740_s1 + $0x19c] ss:$12 sps:$4 sm:$0xff]  }
  0x83   :  { %2947 = vmatmul.mubr.bf16.vlgmr.msra.gmra.mrb[8].mxu1 %v3933_v37  ;;  %1177 = vmatpush1.bf16.msra.mxu0 %v3317_v45  ;;  %v3321_v45 = vld [vmem:[%s4740_s1 + $0x18] ss:$12 sps:$4 sm:$0xff]  }
  0x84   :  { %1218 = vmatpush1.bf16.msra.mxu1 %v3318_v34  ;;  %1178 = vmatprep.subr.bf16.mxu0 %v3319_v51  ;;  %v3322_v37 = vld [vmem:[%s4740_s1 + $0x198] ss:$12 sps:$4 sm:$0xff]   ;;  %v3323_v34 = vld [vmem:[%s4740_s1 + $0x34] ss:$12 sps:$4 sm:$0xff]   ;;  %v3325_v51 = vld [vmem:[%s4740_s1 + $0x30] ss:$12 sps:$4 sm:$0xff]  }
  0x85   :  { %1219 = vmatprep.subr.bf16.mxu1 %v3320_v55  ;;  %1208 = vmatprep.mubr.bf16.mxu0 %v3597_v3  ;;  %v3326_v55 = vld [vmem:[%s4740_s1 + $0x1b0] ss:$12 sps:$4 sm:$0xff]  }
  0x86   :  { %1249 = vmatprep.mubr.bf16.mxu1 %v3601_v5 }
  0x87   :  { %1179 = vmatpush1.bf16.msra.mxu0 %v3321_v45  ;;  %v3327_v45 = vld [vmem:[%s4740_s1 + $0x4c] ss:$12 sps:$4 sm:$0xff]  }
  0x88   :  { %1220 = vmatpush1.bf16.msra.mxu1 %v3322_v37  ;;  %1180 = vmatprep.subr.bf16.mxu0 %v3323_v34  ;;  %v3328_v37 = vld [vmem:[%s4740_s1 + $0x1cc] ss:$12 sps:$4 sm:$0xff]   ;;  %v3329_v34 = vld [vmem:[%s4740_s1 + $0x48] ss:$12 sps:$4 sm:$0xff]  }
  0x89   :  { %1221 = vmatprep.subr.bf16.mxu1 %v3324_v52  ;;  %v3330_v52 = vld [vmem:[%s4740_s1 + $0x1c8] ss:$12 sps:$4 sm:$0xff]  }
  0x8b   :  { %1181 = vmatpush1.bf16.msra.mxu0 %v3325_v51  ;;  %v3331_v51 = vld [vmem:[%s4740_s1 + $0x64] ss:$12 sps:$4 sm:$0xff]  }
  0x8c   :  { %1222 = vmatpush1.bf16.msra.mxu1 %v3326_v55  ;;  %1182 = vmatprep.subr.bf16.mxu0 %v3327_v45  ;;  %v3332_v55 = vld [vmem:[%s4740_s1 + $0x1e4] ss:$12 sps:$4 sm:$0xff]   ;;  %v3333_v45 = vld [vmem:[%s4740_s1 + $0x60] ss:$12 sps:$4 sm:$0xff]  }
  0x8d   :  { %1223 = vmatprep.subr.bf16.mxu1 %v3328_v37  ;;  %v3334_v37 = vld [vmem:[%s4740_s1 + $0x1e0] ss:$12 sps:$4 sm:$0xff]  }
  0x8f   :  { %1183 = vmatpush1.bf16.msra.mxu0 %v3329_v34  ;;  %v3335_v34 = vld [vmem:[%s4740_s1 + $0x7c] ss:$12 sps:$4 sm:$0xff]  }
  0x90   :  { %1224 = vmatpush1.bf16.msra.mxu1 %v3330_v52  ;;  %1184 = vmatprep.subr.bf16.mxu0 %v3331_v51  ;;  %v3336_v52 = vld [vmem:[%s4740_s1 + $0x1fc] ss:$12 sps:$4 sm:$0xff]   ;;  %v3337_v51 = vld [vmem:[%s4740_s1 + $0x78] ss:$12 sps:$4 sm:$0xff]  }
  0x91   :  { %1225 = vmatprep.subr.bf16.mxu1 %v3332_v55  ;;  %v3338_v55 = vld [vmem:[%s4740_s1 + $0x1f8] ss:$12 sps:$4 sm:$0xff]  }
  0x93   :  { %1185 = vmatpush1.bf16.msra.mxu0 %v3333_v45  ;;  %v3339_v45 = vld [vmem:[%s4740_s1 + $0x94] ss:$12 sps:$4 sm:$0xff]  }
  0x94   :  { %1226 = vmatpush1.bf16.msra.mxu1 %v3334_v37  ;;  %1186 = vmatprep.subr.bf16.mxu0 %v3335_v34  ;;  %v3340_v37 = vld [vmem:[%s4740_s1 + $0x214] ss:$12 sps:$4 sm:$0xff]   ;;  %v3341_v34 = vld [vmem:[%s4740_s1 + $0x90] ss:$12 sps:$4 sm:$0xff]  }
  0x95   :  { %1227 = vmatprep.subr.bf16.mxu1 %v3336_v52  ;;  %v3342_v52 = vld [vmem:[%s4740_s1 + $0x210] ss:$12 sps:$4 sm:$0xff]  }
  0x97   :  { %1187 = vmatpush1.bf16.msra.mxu0 %v3337_v51  ;;  %v3343_v51 = vld [vmem:[%s4740_s1 + $0xac] ss:$12 sps:$4 sm:$0xff]  }
  0x98   :  { %1228 = vmatpush1.bf16.msra.mxu1 %v3338_v55  ;;  %1188 = vmatprep.subr.bf16.mxu0 %v3339_v45  ;;  %v3344_v55 = vld [vmem:[%s4740_s1 + $0x22c] ss:$12 sps:$4 sm:$0xff]  }
  0x99   :  { %1229 = vmatprep.subr.bf16.mxu1 %v3340_v37 }
  0x9b   :  { %1189 = vmatpush1.bf16.msra.mxu0 %v3341_v34 }
  0x9c   :  { %1230 = vmatpush1.bf16.msra.mxu1 %v3342_v52  ;;  %1190 = vmatprep.subr.bf16.mxu0 %v3343_v51 }
  0x9d   :  { %1231 = vmatprep.subr.bf16.mxu1 %v3344_v55 }
  0x9e   :  { %9 = vsyncpa [#allocation3], 0  ;;  %v3345_v45 = vld [vmem:[%s4740_s1 + $0xa8] ss:$12 sps:$4 sm:$0xff]   ;;  %v3347_v34 = vld [vmem:[%s4740_s1 + $0xc4] ss:$12 sps:$4 sm:$0xff]  }
  0x9f   :  { %1191 = vmatpush1.bf16.msra.mxu0 %v3345_v45  ;;  %v3346_v37 = vld [vmem:[%s4740_s1 + $0x228] ss:$12 sps:$4 sm:$0xff]   ;;  %v3348_v52 = vld [vmem:[%s4740_s1 + $0x244] ss:$12 sps:$4 sm:$0xff]   ;;  %v3349_v51 = vld [vmem:[%s4740_s1 + $0xc0] ss:$12 sps:$4 sm:$0xff]  }
  0xa0   :  { %1232 = vmatpush1.bf16.msra.mxu1 %v3346_v37  ;;  %1192 = vmatprep.subr.bf16.mxu0 %v3347_v34  ;;  %v3350_v55 = vld [vmem:[%s4740_s1 + $0x240] ss:$12 sps:$4 sm:$0xff]   ;;  %v3351_v45 = vld [vmem:[%s4740_s1 + $0xdc] ss:$12 sps:$4 sm:$0xff]   ;;  %v3353_v34 = vld [vmem:[%s4740_s1 + $0xd8] ss:$12 sps:$4 sm:$0xff]  }
  0xa1   :  { %1233 = vmatprep.subr.bf16.mxu1 %v3348_v52  ;;  %v3352_v37 = vld [vmem:[%s4740_s1 + $0x25c] ss:$12 sps:$4 sm:$0xff]   ;;  %v3354_v52 = vld [vmem:[%s4740_s1 + $0x258] ss:$12 sps:$4 sm:$0xff]  }
  0xa3   :  { %1193 = vmatpush1.bf16.msra.mxu0 %v3349_v51  ;;  %v3355_v51 = vld [vmem:[%s4740_s1 + $0xf4] ss:$12 sps:$4 sm:$0xff]  }
  0xa4   :  { %1234 = vmatpush1.bf16.msra.mxu1 %v3350_v55  ;;  %1194 = vmatprep.subr.bf16.mxu0 %v3351_v45  ;;  %v3356_v55 = vld [vmem:[%s4740_s1 + $0x274] ss:$12 sps:$4 sm:$0xff]   ;;  %v3357_v45 = vld [vmem:[%s4740_s1 + $0xf0] ss:$12 sps:$4 sm:$0xff]  }
  0xa5   :  { %1235 = vmatprep.subr.bf16.mxu1 %v3352_v37  ;;  %v3358_v37 = vld [vmem:[%s4740_s1 + $0x270] ss:$12 sps:$4 sm:$0xff]  }
  0xa7   :  { %1195 = vmatpush1.bf16.msra.mxu0 %v3353_v34  ;;  %v3359_v34 = vld [vmem:[%s4740_s1 + $0x10c] ss:$12 sps:$4 sm:$0xff]  }
  0xa8   :  { %1236 = vmatpush1.bf16.msra.mxu1 %v3354_v52  ;;  %1196 = vmatprep.subr.bf16.mxu0 %v3355_v51  ;;  %v3360_v52 = vld [vmem:[%s4740_s1 + $0x28c] ss:$12 sps:$4 sm:$0xff]   ;;  %v3361_v51 = vld [vmem:[%s4740_s1 + $0x108] ss:$12 sps:$4 sm:$0xff]  }
  0xa9   :  { %1237 = vmatprep.subr.bf16.mxu1 %v3356_v55  ;;  %v3362_v55 = vld [vmem:[%s4740_s1 + $0x288] ss:$12 sps:$4 sm:$0xff]  }
  0xab   :  { %1197 = vmatpush1.bf16.msra.mxu0 %v3357_v45 }
  0xac   :  { %1238 = vmatpush1.bf16.msra.mxu1 %v3358_v37  ;;  %1198 = vmatprep.subr.bf16.mxu0 %v3359_v34  ;;  %v3191_v37 = vld [vmem:[%s4741_s2 + $0x90] ss:$12 sps:$4 sm:$0xff]  }
  0xad   :  { %1239 = vmatprep.subr.bf16.mxu1 %v3360_v52  ;;  %v3194_v34 = vld [vmem:[%s4741_s2 + $0x210] ss:$12 sps:$4 sm:$0xff]  }
  0xaf   :  { %1199 = vmatpush1.bf16.msra.mxu0 %v3361_v51 }
  0xb0   :  { %1240 = vmatpush1.bf16.msra.mxu1 %v3362_v55  ;;  %1200 = vmatprep.subr.bf16.mxu0 %v3586_v63  ;;  %v4797_v63 = vmov 0   ;;  %v3199_v55 = vld [vmem:[%s4741_s2 + $0xac] ss:$12 sps:$4 sm:$0xff]  }
  0xb1   :  { %1241 = vmatprep.subr.bf16.mxu1 %v3593_v1  ;;  %v4798_v1 = vld [vmem:[#allocation10_spill] sm:$0xff] }
  0xb3   :  { %1201 = vmatpush1.bf16.msra.mxu0 %v3608_v7  ;;  %v4799_v7 = vmov 0.0  }
  0xb4   :  { %1242 = vmatpush1.bf16.msra.mxu1 %v3613_v8  ;;  %1202 = vmatprep.subr.bf16.mxu0 %v3624_v13  ;;  %v4800_v8 = vld [vmem:[#allocation8_spill] sm:$0xff]  ;;  %v4801_v13 = vld [vmem:[#allocation11_spill] sm:$0xff] }
  0xb5   :  { %1243 = vmatprep.subr.bf16.mxu1 %v3633_v16  ;;  %v4802_v16 = vld [vmem:[#allocation12_spill] sm:$0xff] }
  0xb7   :  { %1203 = vmatpush1.bf16.msra.mxu0 %v3638_v18  ;;  %v4803_v18 = vld [vmem:[#allocation13_spill] sm:$0xff] }
  0xb8   :  { %1244 = vmatpush1.bf16.msra.mxu1 %v3644_v21  ;;  %1204 = vmatprep.subr.bf16.mxu0 %v3652_v23  ;;  %v4804_v21 = vld [vmem:[#allocation14_spill] sm:$0xff]  ;;  %v4805_v23 = vld [vmem:[#allocation15_spill] sm:$0xff] }
  0xb9   :  { %1245 = vmatprep.subr.bf16.mxu1 %v3660_v25  ;;  %v4806_v25 = vld [vmem:[#allocation16_spill] sm:$0xff] }
  0xbb   :  { %1205 = vmatpush1.bf16.msra.mxu0 %v3666_v28  ;;  %v4807_v28 = vld [vmem:[#allocation17_spill] sm:$0xff] }
  0xbc   :  { %1246 = vmatpush1.bf16.msra.mxu1 %v3673_v29  ;;  %1206 = vmatprep.subr.bf16.mxu0 %v3681_v31  ;;  %v4808_v29 = vld [vmem:[#allocation18_spill] sm:$0xff]  ;;  %v4809_v31 = vld [vmem:[#allocation19_spill] sm:$0xff] }
  0xbd   :  { %1247 = vmatprep.subr.bf16.mxu1 %v3686_v32  ;;  %v4810_v32 = vld [vmem:[#allocation20_spill] sm:$0xff] }
  0xbf   :  { %1207 = vmatpush1.bf16.msra.mxu0 %v3691_v35  ;;  %v4811_v35 = vld [vmem:[#allocation21_spill] sm:$0xff] }
  0xc0   :  { %1248 = vmatpush1.bf16.msra.mxu1 %v3698_v36  ;;  %1258 = vmatprep.subr.bf16.mxu0 %v3705_v38  ;;  %v4812_v36 = vld [vmem:[#allocation22_spill] sm:$0xff]  ;;  %v4813_v38 = vld [vmem:[#allocation23_spill] sm:$0xff] }
  0xc1   :  { %2824 = vmatprep.subr.bf16.mxu1 %v3712_v40  ;;  %v4814_v40 = vld [vmem:[#allocation24_spill] sm:$0xff] }
  0xc2   :  { %1209 = vmatmul.mubr.bf16.vlgmr.msra.gmra.mrb[12].mxu0 %v3595_v2 }
  0xc3   :  { %1250 = vmatmul.mubr.bf16.vlgmr.msra.gmra.mrb[12].mxu1 %v3599_v4  ;;  %1259 = vmatpush1.bf16.msra.mxu0 %v3726_v47  ;;  %v4815_v47 = vld [vmem:[#allocation25_spill] sm:$0xff] }
  0xc4   :  { %2825 = vmatpush3.bf16.msra.mxu1 %v3731_v48  ;;  %1260 = vmatprep.subr.bf16.mxu0 %v3742_v54  ;;  %v4816_v48 = vld [vmem:[#allocation26_spill] sm:$0xff] }
  0xc5   :  { %2826 = vmatprep.subr.bf16.mxu1 %v3751_v56  ;;  %1290 = vmatprep.mubr.bf16.mxu0 %v4797_v63  ;;  %v3157_v54 = vld [vmem:[%s4741_s2 + $0x4] ss:$12 sps:$4 sm:$0xff]   ;;  %v4817_v56 = vld [vmem:[#allocation27_spill] sm:$0xff] }
  0xc6   :  { %1331 = vmatprep.mubr.bf16.mxu1 %v3597_v3 }
  0xc7   :  { %1261 = vmatpush1.bf16.msra.mxu0 %v3759_v57  ;;  %v3163_v57 = vld [vmem:[%s4741_s2 + $0x1c] ss:$12 sps:$4 sm:$0xff]  }
  0xc8   :  { %2827 = vmatpush3.bf16.msra.mxu1 %v3764_v58  ;;  %1262 = vmatprep.subr.bf16.mxu0 %v3771_v59  ;;  %v3161_v58 = vld [vmem:[%s4741_s2 + $0x18] ss:$12 sps:$4 sm:$0xff]  }
  0xc9   :  { %2828 = vmatprep.subr.bf16.mxu1 %v3778_v60  ;;  %v3164_v59 = vld [vmem:[%s4741_s2 + $0x198] ss:$12 sps:$4 sm:$0xff]   ;;  %v3169_v60 = vld [vmem:[%s4741_s2 + $0x34] ss:$12 sps:$4 sm:$0xff]  }
  0xcb   :  { %1263 = vmatpush1.bf16.msra.mxu0 %v3783_v61  ;;  %v3172_v61 = vld [vmem:[%s4741_s2 + $0x1b4] ss:$12 sps:$4 sm:$0xff]  }
  0xcc   :  { %2829 = vmatpush3.bf16.msra.mxu1 %v3789_v0  ;;  %1264 = vmatprep.subr.bf16.mxu0 %v3796_v9  ;;  %v3170_v0 = vld [vmem:[%s4741_s2 + $0x1b0] ss:$12 sps:$4 sm:$0xff]   ;;  %v3175_v9 = vld [vmem:[%s4741_s2 + $0x4c] ss:$12 sps:$4 sm:$0xff]  }
  0xcd   :  { %2830 = vmatprep.subr.bf16.mxu1 %v3803_v10  ;;  %v3178_v10 = vld [vmem:[%s4741_s2 + $0x1cc] ss:$12 sps:$4 sm:$0xff]  }
  0xcf   :  { %1265 = vmatpush1.bf16.msra.mxu0 %v3808_v11  ;;  %v3173_v11 = vld [vmem:[%s4741_s2 + $0x48] ss:$12 sps:$4 sm:$0xff]  }
  0xd0   :  { %2831 = vmatpush3.bf16.msra.mxu1 %v3813_v14  ;;  %1266 = vmatprep.subr.bf16.mxu0 %v3820_v15  ;;  %v3176_v14 = vld [vmem:[%s4741_s2 + $0x1c8] ss:$12 sps:$4 sm:$0xff]   ;;  %v3181_v15 = vld [vmem:[%s4741_s2 + $0x64] ss:$12 sps:$4 sm:$0xff]  }
  0xd1   :  { %2832 = vmatprep.subr.bf16.mxu1 %v3827_v17  ;;  %v3184_v17 = vld [vmem:[%s4741_s2 + $0x1e4] ss:$12 sps:$4 sm:$0xff]  }
  0xd3   :  { %1267 = vmatpush1.bf16.msra.mxu0 %v3832_v19  ;;  %v3179_v19 = vld [vmem:[%s4741_s2 + $0x60] ss:$12 sps:$4 sm:$0xff]  }
  0xd4   :  { %2833 = vmatpush3.bf16.msra.mxu1 %v3837_v20  ;;  %1268 = vmatprep.subr.bf16.mxu0 %v3844_v22  ;;  %v3182_v20 = vld [vmem:[%s4741_s2 + $0x1e0] ss:$12 sps:$4 sm:$0xff]   ;;  %v3187_v22 = vld [vmem:[%s4741_s2 + $0x7c] ss:$12 sps:$4 sm:$0xff]  }
  0xd5   :  { %2834 = vmatprep.subr.bf16.mxu1 %v3851_v24  ;;  %v3190_v24 = vld [vmem:[%s4741_s2 + $0x1fc] ss:$12 sps:$4 sm:$0xff]  }
  0xd7   :  { %1269 = vmatpush1.bf16.msra.mxu0 %v3856_v26  ;;  %v3185_v26 = vld [vmem:[%s4741_s2 + $0x78] ss:$12 sps:$4 sm:$0xff]  }
  0xd8   :  { %2835 = vmatpush3.bf16.msra.mxu1 %v3861_v27  ;;  %1270 = vmatprep.subr.bf16.mxu0 %v3868_v30  ;;  %v3188_v27 = vld [vmem:[%s4741_s2 + $0x1f8] ss:$12 sps:$4 sm:$0xff]   ;;  %v3193_v30 = vld [vmem:[%s4741_s2 + $0x94] ss:$12 sps:$4 sm:$0xff]  }
  0xd9   :  { %2836 = vmatprep.subr.bf16.mxu1 %v3875_v33  ;;  %v3196_v33 = vld [vmem:[%s4741_s2 + $0x214] ss:$12 sps:$4 sm:$0xff]  }
  0xdb   :  { %1271 = vmatpush1.bf16.msra.mxu0 %v3880_v41 }
  0xdc   :  { %2837 = vmatpush3.bf16.msra.mxu1 %v3885_v42  ;;  %1272 = vmatprep.subr.bf16.mxu0 %v3892_v43 }
  0xdd   :  { %2838 = vmatprep.subr.bf16.mxu1 %v3899_v46 }
  0xdf   :  { %1273 = vmatpush1.bf16.msra.mxu0 %v3904_v49 }
  0xe0   :  { %2839 = vmatpush3.bf16.msra.mxu1 %v3914_v62  ;;  %2846 = vmatprep.subr.bf16.mxu0 %v4798_v1  ;;  %v3167_v62 = vld [vmem:[%s4741_s2 + $0x30] ss:$12 sps:$4 sm:$0xff]   ;;  %v3202_v1 = vld [vmem:[%s4741_s2 + $0x22c] ss:$12 sps:$4 sm:$0xff]  }
  0xe1   :  { %2950 = vmatprep.subr.bf16.mxu1 %v4799_v7 }
  0xe2   :  { %1291 = vmatmul.mubr.bf16.vlgmr.msra.gmra.mrb[16].mxu0 %v4800_v8 }
  0xe3   :  { %1332 = vmatmul.mubr.bf16.vlgmr.msra.gmra.mrb[16].mxu1 %v3595_v2  ;;  %2847 = vmatpush3.bf16.msra.mxu0 %v3926_v39 }
  0xe4   :  { %2951 = vmatpush3.bf16.msra.mxu1 %v4801_v13  ;;  %2848 = vmatprep.subr.bf16.mxu0 %v4802_v16  ;;  %v3197_v13 = vld [vmem:[%s4741_s2 + $0xa8] ss:$12 sps:$4 sm:$0xff]  }
  0xe5   :  { %2952 = vmatprep.subr.bf16.mxu1 %v4799_v7  ;;  %1371 = vmatprep.mubr.bf16.mxu0 %v3601_v5  ;;  %v3200_v16 = vld [vmem:[%s4741_s2 + $0x228] ss:$12 sps:$4 sm:$0xff]  }
  0xe6   :  { %2966 = vmatprep.mubr.msk.bf16.mxu1 %vm3390_vm0, %v4799_v7 }
  0xe7   :  { %2849 = vmatpush3.bf16.msra.mxu0 %v4803_v18  ;;  %v3205_v18 = vld [vmem:[%s4741_s2 + $0xc4] ss:$12 sps:$4 sm:$0xff]  }
  0xe8   :  { %2953 = vmatpush3.bf16.msra.mxu1 %v4804_v21  ;;  %2850 = vmatprep.subr.bf16.mxu0 %v4805_v23  ;;  %v3208_v21 = vld [vmem:[%s4741_s2 + $0x244] ss:$12 sps:$4 sm:$0xff]   ;;  %v3203_v23 = vld [vmem:[%s4741_s2 + $0xc0] ss:$12 sps:$4 sm:$0xff]  }
  0xe9   :  { %2954 = vmatprep.subr.bf16.mxu1 %v4799_v7 }
  0xeb   :  { %2851 = vmatpush3.bf16.msra.mxu0 %v4806_v25  ;;  %v3206_v25 = vld [vmem:[%s4741_s2 + $0x240] ss:$12 sps:$4 sm:$0xff]  }
  0xec   :  { %2955 = vmatpush3.bf16.msra.mxu1 %v4807_v28  ;;  %2852 = vmatprep.subr.bf16.mxu0 %v4808_v29  ;;  %v3211_v28 = vld [vmem:[%s4741_s2 + $0xdc] ss:$12 sps:$4 sm:$0xff]  }
  0xed   :  { %2956 = vmatprep.subr.bf16.mxu1 %v4799_v7  ;;  %v3214_v29 = vld [vmem:[%s4741_s2 + $0x25c] ss:$12 sps:$4 sm:$0xff]  }
  0xef   :  { %2853 = vmatpush3.bf16.msra.mxu0 %v4809_v31  ;;  %v3209_v31 = vld [vmem:[%s4741_s2 + $0xd8] ss:$12 sps:$4 sm:$0xff]  }
  0xf0   :  { %2957 = vmatpush3.bf16.msra.mxu1 %v4810_v32  ;;  %2854 = vmatprep.subr.bf16.mxu0 %v4811_v35  ;;  %v3212_v32 = vld [vmem:[%s4741_s2 + $0x258] ss:$12 sps:$4 sm:$0xff]   ;;  %v3217_v35 = vld [vmem:[%s4741_s2 + $0xf4] ss:$12 sps:$4 sm:$0xff]  }
  0xf1   :  { %2958 = vmatprep.subr.bf16.mxu1 %v4799_v7 }
  0xf3   :  { %2855 = vmatpush3.bf16.msra.mxu0 %v4812_v36  ;;  %v3220_v36 = vld [vmem:[%s4741_s2 + $0x274] ss:$12 sps:$4 sm:$0xff]  }
  0xf4   :  { %2959 = vmatpush3.bf16.msra.mxu1 %v4813_v38  ;;  %2856 = vmatprep.subr.bf16.mxu0 %v4814_v40  ;;  %v3215_v38 = vld [vmem:[%s4741_s2 + $0xf0] ss:$12 sps:$4 sm:$0xff]  }
  0xf5   :  { %2960 = vmatprep.subr.bf16.mxu1 %v4799_v7  ;;  %v3218_v40 = vld [vmem:[%s4741_s2 + $0x270] ss:$12 sps:$4 sm:$0xff]  }
  0xf7   :  { %2857 = vmatpush3.bf16.msra.mxu0 %v4028_v50  ;;  %v3160_v50 = vld [vmem:[%s4741_s2 + $0x184] ss:$12 sps:$4 sm:$0xff]  }
  0xf8   :  { %2961 = vmatpush3.bf16.msra.mxu1 %v4815_v47  ;;  %2858 = vmatprep.subr.bf16.mxu0 %v4816_v48  ;;  %v3223_v47 = vld [vmem:[%s4741_s2 + $0x10c] ss:$12 sps:$4 sm:$0xff]  }
  0xf9   :  { %2962 = vmatprep.subr.bf16.mxu1 %v4799_v7  ;;  %v3226_v48 = vld [vmem:[%s4741_s2 + $0x28c] ss:$12 sps:$4 sm:$0xff]  }
  0xfb   :  { %2859 = vmatpush3.bf16.msra.mxu0 %v4047_v44  ;;  %v3155_v44 = vld [vmem:[%s4741_s2] ss:$12 sps:$4 sm:$0xff]  }
  0xfc   :  { %2963 = vmatpush3.bf16.msra.mxu1 %v4052_v53  ;;  %2860 = vmatprep.subr.bf16.mxu0 %v4057_v6  ;;  %v3158_v6 = vld [vmem:[%s4741_s2 + $0x180] ss:$12 sps:$4 sm:$0xff]  }
  0xfd   :  { %2964 = vmatprep.subr.bf16.mxu1 %v4799_v7 }
  0xff   :  { %2861 = vmatpush3.bf16.msra.mxu0 %v4066_v12  ;;  %v3166_v12 = vld [vmem:[%s4741_s2 + $0x19c] ss:$12 sps:$4 sm:$0xff]  }
 0x100   :  { %2965 = vmatpush3.bf16.msra.mxu1 %v4817_v56  ;;  %2219 = vmatprep.subr.bf16.mxu0 %v3157_v54  ;;  %v3221_v54 = vld [vmem:[%s4741_s2 + $0x108] ss:$12 sps:$4 sm:$0xff]   ;;  %v3229_v56 = vld [vmem:[%s4741_s2 + $0x124] ss:$12 sps:$4 sm:$0xff]  }
 0x101   :  { %2260 = vmatprep.subr.bf16.mxu1 %v3160_v50  ;;  %v3224_v50 = vld [vmem:[%s4741_s2 + $0x288] ss:$12 sps:$4 sm:$0xff]  }
 0x102   :  { %1372 = vmatmul.mubr.bf16.vlgmr.msra.gmra.mrb[20].mxu0 %v3599_v4 }
 0x103   :  { %2967 = vmatmul.mubr.bf16.vlgmr.msra.gmra.mrb[20].mxu1 %v4800_v8  ;;  %2220 = vmatpush1.bf16.msra.mxu0 %v3155_v44  ;;  %v3232_v44 = vld [vmem:[%s4741_s2 + $0x2a4] ss:$12 sps:$4 sm:$0xff]  }
 0x104   :  { %2261 = vmatpush1.bf16.msra.mxu1 %v3158_v6  ;;  %2221 = vmatprep.subr.bf16.mxu0 %v3163_v57  ;;  %v3227_v6 = vld [vmem:[%s4741_s2 + $0x120] ss:$12 sps:$4 sm:$0xff]  }
 0x105   :  { %2262 = vmatprep.subr.bf16.mxu1 %v3166_v12  ;;  %2251 = vmatprep.mubr.bf16.mxu0 %v3597_v3  ;;  %v3230_v57 = vld [vmem:[%s4741_s2 + $0x2a0] ss:$12 sps:$4 sm:$0xff]   ;;  %v3235_v12 = vld [vmem:[%s4741_s2 + $0x13c] ss:$12 sps:$4 sm:$0xff]  }
 0x106   :  { %2292 = vmatprep.mubr.bf16.mxu1 %v3601_v5 }
 0x107   :  { %2222 = vmatpush1.bf16.msra.mxu0 %v3161_v58  ;;  %v3238_v58 = vld [vmem:[%s4741_s2 + $0x2bc] ss:$12 sps:$4 sm:$0xff]  }
 0x108   :  { %2263 = vmatpush1.bf16.msra.mxu1 %v3164_v59  ;;  %2223 = vmatprep.subr.bf16.mxu0 %v3169_v60  ;;  %v3233_v59 = vld [vmem:[%s4741_s2 + $0x138] ss:$12 sps:$4 sm:$0xff]  }
 0x109   :  { %2264 = vmatprep.subr.bf16.mxu1 %v3172_v61  ;;  %v3236_v60 = vld [vmem:[%s4741_s2 + $0x2b8] ss:$12 sps:$4 sm:$0xff]   ;;  %v3241_v61 = vld [vmem:[%s4741_s2 + $0x154] ss:$12 sps:$4 sm:$0xff]  }
 0x10b   :  { %2224 = vmatpush1.bf16.msra.mxu0 %v3167_v62  ;;  %v3244_v62 = vld [vmem:[%s4741_s2 + $0x2d4] ss:$12 sps:$4 sm:$0xff]  }
 0x10c   :  { %2265 = vmatpush1.bf16.msra.mxu1 %v3170_v0  ;;  %2225 = vmatprep.subr.bf16.mxu0 %v3175_v9 }
 0x10d   :  { %2266 = vmatprep.subr.bf16.mxu1 %v3178_v10 }
 0x10f   :  { %2226 = vmatpush1.bf16.msra.mxu0 %v3173_v11 }
 0x110   :  { %2267 = vmatpush1.bf16.msra.mxu1 %v3176_v14  ;;  %2227 = vmatprep.subr.bf16.mxu0 %v3181_v15 }
 0x111   :  { %2268 = vmatprep.subr.bf16.mxu1 %v3184_v17 }
 0x113   :  { %2228 = vmatpush1.bf16.msra.mxu0 %v3179_v19 }
 0x114   :  { %2269 = vmatpush1.bf16.msra.mxu1 %v3182_v20  ;;  %2229 = vmatprep.subr.bf16.mxu0 %v3187_v22  ;;  %v3239_v22 = vld [vmem:[%s4741_s2 + $0x150] ss:$12 sps:$4 sm:$0xff]  }
 0x115   :  { %2270 = vmatprep.subr.bf16.mxu1 %v3190_v24  ;;  %v967_v41 = vpop.f32.mrb[0].mxu0  ;;  %v3242_v24 = vld [vmem:[%s4741_s2 + $0x2d0] ss:$12 sps:$4 sm:$0xff]  }
 0x116   :  { %v1008_v42 = vpop.f32.mrb[0].mxu1  ;;  %v969_v46 = vpop.f32.mrb[1].mxu0 }
 0x117   :  { %v4398_v43 = vadd.f32 %v1008_v42, %v967_v41  ;;  %v1010_v49 = vpop.f32.mrb[1].mxu1  ;;  %v971_v53 = vpop.f32.mrb[2].mxu0  ;;  %2230 = vmatpush1.bf16.msra.mxu0 %v3185_v26  ;;  %v3245_v41 = vld [vmem:[%s4741_s2 + $0x168] ss:$12 sps:$4 sm:$0xff]  }
 0x118   :  { %v4400_v39 = vadd.f32 %v1010_v49, %v969_v46  ;;  %2271 = vmatpush1.bf16.msra.mxu1 %v3188_v27  ;;  %v1012_v45 = vpop.f32.mrb[2].mxu1  ;;  %v972_v52 = vpop.f32.mrb[3].mxu0  ;;  %2231 = vmatprep.subr.bf16.mxu0 %v3193_v30  ;;  %v3247_v30 = vld [vmem:[%s4741_s2 + $0x16c] ss:$12 sps:$4 sm:$0xff]   ;;  %v3248_v42 = vld [vmem:[%s4741_s2 + $0x2e8] ss:$12 sps:$4 sm:$0xff]  }
 0x119   :  { %2272 = vmatprep.subr.bf16.mxu1 %v3196_v33  ;;  %v1013_v51 = vpop.f32.mrb[3].mxu1  ;;  %v3250_v33 = vld [vmem:[%s4741_s2 + $0x2ec] ss:$12 sps:$4 sm:$0xff]   ;;  %v3254_v46 = vld [vmem:[%s4741_s2 + $0xc8] ss:$12 sps:$4 sm:$0xff]  }
 0x11a   :  { %v3251_v49 = vld [vmem:[%s4741_s2 + $0x300] ss:$12 sps:$4 sm:$0xff]   ;;  %v3258_v53 = vld [vmem:[%s4741_s2 + $0x31c] ss:$12 sps:$4 sm:$0xff]   ;;  %v3264_v51 = vld [vmem:[%s4741_s2 + $0xf8] ss:$12 sps:$4 sm:$0xff]  }
 0x11b   :  { %2232 = vmatpush1.bf16.msra.mxu0 %v3191_v37  ;;  %v3259_v45 = vld [vmem:[%s4741_s2 + $0xe0] ss:$12 sps:$4 sm:$0xff]   ;;  %v3256_v37 = vld [vmem:[%s4741_s2 + $0x318] ss:$12 sps:$4 sm:$0xff]  }
 0x11c   :  { %2273 = vmatpush1.bf16.msra.mxu1 %v3194_v34  ;;  %2233 = vmatprep.subr.bf16.mxu0 %v3199_v55  ;;  %v3260_v34 = vld [vmem:[%s4741_s2 + $0x20] ss:$12 sps:$4 sm:$0xff]   ;;  %v3261_v55 = vld [vmem:[%s4741_s2 + $0x330] ss:$12 sps:$4 sm:$0xff]  }
 0x11d   :  { %2274 = vmatprep.subr.bf16.mxu1 %v3202_v1  ;;  %v3263_v52 = vld [vmem:[%s4741_s2 + $0x334] ss:$12 sps:$4 sm:$0xff]   ;;  %v3265_v1 = vld [vmem:[%s4741_s2 + $0x38] ss:$12 sps:$4 sm:$0xff]  }
 0x11f   :  { %2234 = vmatpush1.bf16.msra.mxu0 %v3197_v13  ;;  %v3268_v13 = vld [vmem:[%s4741_s2 + $0x34c] ss:$12 sps:$4 sm:$0xff]  }
 0x120   :  { %2275 = vmatpush1.bf16.msra.mxu1 %v3200_v16  ;;  %2235 = vmatprep.subr.bf16.mxu0 %v3205_v18  ;;  %v3270_v16 = vld [vmem:[%s4741_s2 + $0x50] ss:$12 sps:$4 sm:$0xff]  }
 0x121   :  { %2276 = vmatprep.subr.bf16.mxu1 %v3208_v21  ;;  %v3273_v18 = vld [vmem:[%s4741_s2 + $0x364] ss:$12 sps:$4 sm:$0xff]   ;;  %v3274_v21 = vld [vmem:[%s4741_s2 + $0x128] ss:$12 sps:$4 sm:$0xff]  }
 0x123   :  { %2236 = vmatpush1.bf16.msra.mxu0 %v3203_v23  ;;  %v3271_v23 = vld [vmem:[%s4741_s2 + $0x360] ss:$12 sps:$4 sm:$0xff]  }
 0x124   :  { %2277 = vmatpush1.bf16.msra.mxu1 %v3206_v25  ;;  %2237 = vmatprep.subr.bf16.mxu0 %v3211_v28  ;;  %v3275_v25 = vld [vmem:[%s4741_s2 + $0x68] ss:$12 sps:$4 sm:$0xff]  }
 0x125   :  { %2278 = vmatprep.subr.bf16.mxu1 %v3214_v29  ;;  %v3278_v28 = vld [vmem:[%s4741_s2 + $0x37c] ss:$12 sps:$4 sm:$0xff]   ;;  %v3279_v29 = vld [vmem:[%s4741_s2 + $0x140] ss:$12 sps:$4 sm:$0xff]  }
 0x127   :  { %2238 = vmatpush1.bf16.msra.mxu0 %v3209_v31  ;;  %v3276_v31 = vld [vmem:[%s4741_s2 + $0x378] ss:$12 sps:$4 sm:$0xff]  }
 0x128   :  { %2279 = vmatpush1.bf16.msra.mxu1 %v3212_v32  ;;  %2239 = vmatprep.subr.bf16.mxu0 %v3217_v35  ;;  %v3280_v32 = vld [vmem:[%s4741_s2 + $0x80] ss:$12 sps:$4 sm:$0xff]  }
 0x129   :  { %2280 = vmatprep.subr.bf16.mxu1 %v3220_v36  ;;  %v3283_v35 = vld [vmem:[%s4741_s2 + $0x394] ss:$12 sps:$4 sm:$0xff]   ;;  %v3284_v36 = vld [vmem:[%s4741_s2 + $0x158] ss:$12 sps:$4 sm:$0xff]  }
 0x12b   :  { %2240 = vmatpush1.bf16.msra.mxu0 %v3215_v38 }
 0x12c   :  { %2281 = vmatpush1.bf16.msra.mxu1 %v3218_v40  ;;  %2241 = vmatprep.subr.bf16.mxu0 %v3223_v47 }
 0x12d   :  { %2282 = vmatprep.subr.bf16.mxu1 %v3226_v48 }
 0x12f   :  { %2242 = vmatpush1.bf16.msra.mxu0 %v3221_v54 }
 0x130   :  { %2283 = vmatpush1.bf16.msra.mxu1 %v3224_v50  ;;  %2243 = vmatprep.subr.bf16.mxu0 %v3229_v56 }
 0x131   :  { %2284 = vmatprep.subr.bf16.mxu1 %v3232_v44  ;;  %v3281_v44 = vld [vmem:[%s4741_s2 + $0x390] ss:$12 sps:$4 sm:$0xff]  }
 0x133   :  { %2244 = vmatpush1.bf16.msra.mxu0 %v3227_v6  ;;  %v3285_v6 = vld [vmem:[%s4741_s2 + $0x98] ss:$12 sps:$4 sm:$0xff]  }
 0x134   :  { %2285 = vmatpush1.bf16.msra.mxu1 %v3230_v57  ;;  %2245 = vmatprep.subr.bf16.mxu0 %v3235_v12 }
 0x135   :  { %2286 = vmatprep.subr.bf16.mxu1 %v3238_v58  ;;  %v1049_v0 = vpop.f32.mrb[4].mxu0  ;;  %v3288_v58 = vld [vmem:[%s4741_s2 + $0x3ac] ss:$12 sps:$4 sm:$0xff]  }
 0x136   :  { %v2787_v9 = vpop.f32.mrb[4].mxu1  ;;  %v4499_v10 = vadd.f32 %v1049_v0, %v4398_v43  ;;  %v1051_v11 = vpop.f32.mrb[5].mxu0  ;;  %v3253_v43 = vld [vmem:[%s4741_s2 + $0x304] ss:$12 sps:$4 sm:$0xff]  }
 0x137   :  { %v2788_v14 = vpop.f32.mrb[5].mxu1  ;;  %v4502_v15 = vadd.f32 %v1051_v11, %v4400_v39  ;;  %v1053_v17 = vpop.f32.mrb[6].mxu0  ;;  %2246 = vmatpush1.bf16.msra.mxu0 %v3233_v59  ;;  %v3255_v39 = vld [vmem:[%s4741_s2 + $0x8] ss:$12 sps:$4 sm:$0xff]   ;;  %v3289_v59 = vld [vmem:[%s4741_s2 + $0x170] ss:$12 sps:$4 sm:$0xff]  }
 0x138   :  { %2287 = vmatpush1.bf16.msra.mxu1 %v3236_v60  ;;  %v4504_v19 = vadd.f32 %v2788_v14, %v2787_v9  ;;  %v2790_v20 = vpop.f32.mrb[6].mxu1  ;;  %v1054_v26 = vpop.f32.mrb[7].mxu0  ;;  %2247 = vmatprep.subr.bf16.mxu0 %v3241_v61  ;;  %v3290_v0 = vld [vmem:[%s4741_s2 + $0xb0] ss:$12 sps:$4 sm:$0xff]   ;;  %v3291_v9 = vld [vmem:[%s4741_s2 + $0x248] ss:$12 sps:$4 sm:$0xff]  }
 0x139   :  { %2288 = vmatprep.subr.bf16.mxu1 %v3244_v62  ;;  %v2791_v27 = vpop.f32.mrb[7].mxu1  ;;  %v3286_v62 = vld [vmem:[%s4741_s2 + $0x3a8] ss:$12 sps:$4 sm:$0xff]   ;;  %v3294_v17 = vld [vmem:[%s4741_s2 + $0x260] ss:$12 sps:$4 sm:$0xff]  }
 0x13a   :  { %v3292_v11 = vld [vmem:[%s4741_s2 + $0x188] ss:$12 sps:$4 sm:$0xff]   ;;  %v3296_v20 = vld [vmem:[%s4741_s2 + $0x320] ss:$12 sps:$4 sm:$0xff]   ;;  %v3301_v26 = vld [vmem:[%s4741_s2 + $0x1d0] ss:$12 sps:$4 sm:$0xff]  }
 0x13b   :  { %2248 = vmatpush1.bf16.msra.mxu0 %v3239_v22  ;;  %v3293_v14 = vld [vmem:[%s4741_s2 + $0x308] ss:$12 sps:$4 sm:$0xff]   ;;  %v3297_v22 = vld [vmem:[%s4741_s2 + $0x278] ss:$12 sps:$4 sm:$0xff]   ;;  %v3302_v27 = vld [vmem:[%s4741_s2 + $0x350] ss:$12 sps:$4 sm:$0xff]  }
 0x13c   :  { %2289 = vmatpush1.bf16.msra.mxu1 %v3242_v24  ;;  %2249 = vmatprep.subr.bf16.mxu0 %v3247_v30  ;;  %v3299_v24 = vld [vmem:[%s4741_s2 + $0x338] ss:$12 sps:$4 sm:$0xff]   ;;  %v3303_v30 = vld [vmem:[%s4741_s2 + $0x2a8] ss:$12 sps:$4 sm:$0xff]  }
 0x13d   :  { %2290 = vmatprep.subr.bf16.mxu1 %v3250_v33  ;;  %v3304_v33 = vld [vmem:[%s4741_s2 + $0x1e8] ss:$12 sps:$4 sm:$0xff]  }
 0x13f   :  { %2250 = vmatpush1.bf16.msra.mxu0 %v3245_v41  ;;  %v3305_v41 = vld [vmem:[%s4741_s2 + $0x368] ss:$12 sps:$4 sm:$0xff]  }
 0x140   :  { %2291 = vmatpush1.bf16.msra.mxu1 %v3248_v42  ;;  %2301 = vmatprep.subr.bf16.mxu0 %v3253_v43  ;;  %v3306_v42 = vld [vmem:[%s4741_s2 + $0x2c0] ss:$12 sps:$4 sm:$0xff]  }
 0x141   :  { %2877 = vmatprep.subr.bf16.mxu1 %v3254_v46  ;;  %v3307_v43 = vld [vmem:[%s4741_s2 + $0x200] ss:$12 sps:$4 sm:$0xff]  }
 0x142   :  { %2252 = vmatmul.mubr.bf16.vlgmr.msra.gmra.mrb[24].mxu0 %v3595_v2  ;;  %v3308_v46 = vld [vmem:[%s4741_s2 + $0x380] ss:$12 sps:$4 sm:$0xff]  }
 0x143   :  { %2293 = vmatmul.mubr.bf16.vlgmr.msra.gmra.mrb[24].mxu1 %v3599_v4  ;;  %2302 = vmatpush1.bf16.msra.mxu0 %v3251_v49  ;;  %v3309_v49 = vld [vmem:[%s4741_s2 + $0x2d8] ss:$12 sps:$4 sm:$0xff]  }
 0x144   :  { %2878 = vmatpush3.bf16.msra.mxu1 %v3255_v39  ;;  %2303 = vmatprep.subr.bf16.mxu0 %v3258_v53  ;;  %v3310_v39 = vld [vmem:[%s4741_s2 + $0x218] ss:$12 sps:$4 sm:$0xff]  }
 0x145   :  { %2879 = vmatprep.subr.bf16.mxu1 %v3259_v45  ;;  %2333 = vmatprep.mubr.bf16.mxu0 %v4797_v63  ;;  %v3266_v63 = vld [vmem:[%s4741_s2 + $0x348] ss:$12 sps:$4 sm:$0xff]   ;;  %v3311_v53 = vld [vmem:[%s4741_s2 + $0x398] ss:$12 sps:$4 sm:$0xff]   ;;  %v3312_v45 = vld [vmem:[%s4741_s2 + $0x2f0] ss:$12 sps:$4 sm:$0xff]  }
 0x146   :  { %2374 = vmatprep.mubr.bf16.mxu1 %v3597_v3  ;;  %v3269_v3 = vld [vmem:[%s4741_s2 + $0x110] ss:$12 sps:$4 sm:$0xff]  }
 0x147   :  { %2304 = vmatpush1.bf16.msra.mxu0 %v3256_v37  ;;  %v3313_v37 = vld [vmem:[%s4741_s2 + $0x230] ss:$12 sps:$4 sm:$0xff]  }
 0x148   :  { %2880 = vmatpush3.bf16.msra.mxu1 %v3260_v34  ;;  %2305 = vmatprep.subr.bf16.mxu0 %v3263_v52  ;;  %v3314_v34 = vld [vmem:[%s4741_s2 + $0x3b0] ss:$12 sps:$4 sm:$0xff]  }
 0x149   :  { %2881 = vmatprep.subr.bf16.mxu1 %v3264_v51 }
 0x14b   :  { %2306 = vmatpush1.bf16.msra.mxu0 %v3261_v55 }
 0x14c   :  { %2882 = vmatpush3.bf16.msra.mxu1 %v3265_v1  ;;  %2307 = vmatprep.subr.bf16.mxu0 %v3268_v13 }
 0x14d   :  { %2883 = vmatprep.subr.bf16.mxu1 %v3269_v3 }
 0x14f   :  { %2308 = vmatpush1.bf16.msra.mxu0 %v3266_v63 }
 0x150   :  { %2884 = vmatpush3.bf16.msra.mxu1 %v3270_v16  ;;  %2309 = vmatprep.subr.bf16.mxu0 %v3273_v18 }
 0x151   :  { %2885 = vmatprep.subr.bf16.mxu1 %v3274_v21 }
 0x153   :  { %2310 = vmatpush1.bf16.msra.mxu0 %v3271_v23 }
 0x154   :  { %2886 = vmatpush3.bf16.msra.mxu1 %v3275_v25  ;;  %2311 = vmatprep.subr.bf16.mxu0 %v3278_v28 }
 0x155   :  { %2887 = vmatprep.subr.bf16.mxu1 %v3279_v29  ;;  %v2809_v38 = vpop.f32.mrb[8].mxu0 }
 0x156   :  { %v1170_v40 = vpop.f32.mrb[8].mxu1  ;;  %v2810_v47 = vpop.f32.mrb[9].mxu0 }
 0x157   :  { %v2948_v48 = vpop.f32.mrb[9].mxu1  ;;  %v2811_v54 = vadd.f32 %v2810_v47, %v2809_v38  ;;  %v2812_v50 = vpop.f32.mrb[10].mxu0  ;;  %2312 = vmatpush1.bf16.msra.mxu0 %v3276_v31 }
 0x158   :  { %2888 = vmatpush3.bf16.msra.mxu1 %v3280_v32  ;;  %v1173_v56 = vpop.f32.mrb[10].mxu1  ;;  %v2813_v57 = vpop.f32.mrb[11].mxu0  ;;  %2313 = vmatprep.subr.bf16.mxu0 %v3283_v35 }
 0x159   :  { %v2949_v12 = vpop.f32.mrb[11].mxu1  ;;  %2889 = vmatprep.subr.bf16.mxu1 %v3284_v36  ;;  %v1131_v60 = vadd.f32 %v2811_v54, %v4504_v19  ;;  %v3295_v19 = vld [vmem:[%s4741_s2 + $0x1a0] ss:$12 sps:$4 sm:$0xff]  }
 0x15b   :  { %v4619_v61 = vadd.f32 %v1170_v40, %v1131_v60  ;;  %2314 = vmatpush1.bf16.msra.mxu0 %v3281_v44 }
 0x15c   :  { %2890 = vmatpush3.bf16.msra.mxu1 %v3285_v6  ;;  %2315 = vmatprep.subr.bf16.mxu0 %v3288_v58 }
 0x15d   :  { %2891 = vmatprep.subr.bf16.mxu1 %v3289_v59 }
 0x15f   :  { %2316 = vmatpush1.bf16.msra.mxu0 %v3286_v62 }
 0x160   :  { %2892 = vmatpush3.bf16.msra.mxu1 %v3290_v0  ;;  %2899 = vmatprep.subr.bf16.mxu0 %v3291_v9 }
 0x161   :  { %2970 = vmatprep.subr.bf16.mxu1 %v4799_v7 }
 0x162   :  { %2334 = vmatmul.mubr.bf16.vlgmr.msra.gmra.mrb[28].mxu0 %v4800_v8 }
 0x163   :  { %2375 = vmatmul.mubr.bf16.vlgmr.msra.gmra.mrb[28].mxu1 %v3595_v2  ;;  %2900 = vmatpush3.bf16.msra.mxu0 %v3292_v11  ;;  %v3298_v2 = vld [vmem:[%s4741_s2 + $0x1b8] ss:$12 sps:$4 sm:$0xff]  }
 0x164   :  { %2971 = vmatpush3.bf16.msra.mxu1 %v3293_v14  ;;  %2901 = vmatprep.subr.bf16.mxu0 %v3294_v17 }
 0x165   :  { %2972 = vmatprep.subr.bf16.mxu1 %v4799_v7  ;;  %2414 = vmatprep.mubr.bf16.mxu0 %v3601_v5  ;;  %v3300_v5 = vld [vmem:[%s4741_s2 + $0x290] ss:$12 sps:$4 sm:$0xff]  }
 0x166   :  { %2986 = vmatprep.mubr.msk.bf16.mxu1 %vm3390_vm0, %v4799_v7 }
 0x167   :  { %2902 = vmatpush3.bf16.msra.mxu0 %v3295_v19 }
 0x168   :  { %2973 = vmatpush3.bf16.msra.mxu1 %v3296_v20  ;;  %2903 = vmatprep.subr.bf16.mxu0 %v3297_v22  ;;  %v2465_v20 = vld [vmem:[%s4742_s3] sm:$0x7]  ;;  %s3391_s3 = smov [#allocation2]  }
 0x169   :  { %2974 = vmatprep.subr.bf16.mxu1 %v4799_v7  ;;  %s2523_s21 = sshll.u32 %s3391_s3, 4  ;;  %s2524_s21 = int_to_ptr.vmem [resolvable:$true] %s2523_s21 }
 0x16a   :  { %s3363_s22 = scalar_lea.vmem %s2524_s21, 48  ;;  %s3367_s23 = scalar_lea.vmem %s2524_s21, 64 }
 0x16b   :  { %2904 = vmatpush3.bf16.msra.mxu0 %v3298_v2  ;;  %p3364_p0 = scmp.ne.s32.totalorder %s2524_s21, %s3363_s22  ;;  %p3368_p1 = scmp.lt.s32.totalorder %s2524_s21, %s2524_s21 }
 0x16c   :  { %2975 = vmatpush3.bf16.msra.mxu1 %v3299_v24  ;;  %2905 = vmatprep.subr.bf16.mxu0 %v3300_v5  ;;  %v4818_v5 = vld [vmem:[#allocation5_spill] sm:$0xff]  ;;  %p3369_p2 = scmp.lt.s32.totalorder %s3367_s23, %s3363_s22 }
 0x16d   :  { %2976 = vmatprep.subr.bf16.mxu1 %v4799_v7 }
 0x16e   :  { %p3370_p3 = por %p3369_p2, %p3368_p1 }
 0x16f   :  { %2906 = vmatpush3.bf16.msra.mxu0 %v3301_v26  ;;  %v2470_v26 = vrot.slane %v2465_v20, %v4818_v5 }
 0x170   :  { %2977 = vmatpush3.bf16.msra.mxu1 %v3302_v27  ;;  %2907 = vmatprep.subr.bf16.mxu0 %v3303_v30  ;;  %p3371_p4 = pnand %p3370_p3, %p3364_p0 }
 0x171   :  { %2978 = vmatprep.subr.bf16.mxu1 %v4799_v7 }
 0x173   :  { %2908 = vmatpush3.bf16.msra.mxu0 %v3304_v33 }
 0x174   :  { %2979 = vmatpush3.bf16.msra.mxu1 %v3305_v41  ;;  %2909 = vmatprep.subr.bf16.mxu0 %v3306_v42  ;;  %v4819_v41 = vld [vmem:[#allocation6_spill] sm:$0xff] }
 0x175   :  { %2980 = vmatprep.subr.bf16.mxu1 %v4799_v7  ;;  %v2474_v42 = vrot.slane %v2465_v20, %v4819_v41 }
 0x177   :  { %2910 = vmatpush3.bf16.msra.mxu0 %v3307_v43 }
 0x178   :  { %2981 = vmatpush3.bf16.msra.mxu1 %v3308_v46  ;;  %2911 = vmatprep.subr.bf16.mxu0 %v3309_v49 }
 0x179   :  { %2982 = vmatprep.subr.bf16.mxu1 %v4799_v7 }
 0x17b   :  { %2912 = vmatpush3.bf16.msra.mxu0 %v3310_v39 }
 0x17c   :  { %2983 = vmatpush3.bf16.msra.mxu1 %v3311_v53  ;;  %2913 = vmatprep.subr.bf16.mxu0 %v3312_v45 }
 0x17d   :  { %2984 = vmatprep.subr.bf16.mxu1 %v4799_v7 }
 0x17f   :  { %2914 = vmatpush3.bf16.msra.mxu0 %v3313_v37 }
 0x180   :  { %2985 = vmatpush3.bf16.msra.mxu1 %v3314_v34 }
 0x182   :  { %2415 = vmatmul.mubr.bf16.vlgmr.msra.gmra.mrb[32].mxu0 %v3599_v4 }
 0x183   :  { %2987 = vmatmul.mubr.bf16.vlgmr.msra.gmra.mrb[32].mxu1 %v4800_v8 }
 0x195   :  { %v1210_v52 = vpop.f32.mrb[12].mxu0 }
 0x196   :  { %v1251_v51 = vpop.f32.mrb[12].mxu1  ;;  %v1211_v55 = vadd.f32 %v1210_v52, %v4499_v10  ;;  %v1212_v1 = vpop.f32.mrb[13].mxu0 }
 0x197   :  { %v1253_v13 = vpop.f32.mrb[13].mxu1  ;;  %v1213_v3 = vadd.f32 %v1212_v1, %v4502_v15  ;;  %v1214_v63 = vpop.f32.mrb[14].mxu0 }
 0x198   :  { %v1255_v16 = vpop.f32.mrb[14].mxu1  ;;  %v1252_v18 = vadd.f32 %v1251_v51, %v1211_v55  ;;  %v1215_v21 = vpop.f32.mrb[15].mxu0 }
 0x199   :  { %v1256_v23 = vpop.f32.mrb[15].mxu1  ;;  %v1254_v7 = vadd.f32 %v1253_v13, %v1213_v3 }
 0x1b5   :  { %v1292_v25 = vpop.f32.mrb[16].mxu0 }
 0x1b6   :  { %v2840_v28 = vpop.f32.mrb[16].mxu1  ;;  %v1293_v29 = vadd.f32 %v1292_v25, %v1252_v18  ;;  %v1294_v4 = vpop.f32.mrb[17].mxu0 }
 0x1b7   :  { %v2841_v31 = vpop.f32.mrb[17].mxu1  ;;  %v1295_v8 = vadd.f32 %v1294_v4, %v1254_v7  ;;  %v1296_v35 = vpop.f32.mrb[18].mxu0 }
 0x1b8   :  { %v2842_v32 = vadd.f32 %v2841_v31, %v2840_v28  ;;  %v2843_v36 = vpop.f32.mrb[18].mxu1  ;;  %v1297_v10 = vpop.f32.mrb[19].mxu0  ;;  %v4820_v28 = vld [vmem:[#allocation7_spill] sm:$0xff] }
 0x1b9   :  { %v2844_v38 = vpop.f32.mrb[19].mxu1  ;;  %v2478_v4 = vrot.slane %v2465_v20, %v4820_v28  ;;  %v4822_v10 = vlaneseq }
 0x1ba   :  { %v1334_v40 = vadd.f32 %v2842_v32, %v4619_v61  ;;  %v4821_v32 = vld [vmem:[#allocation9_spill] sm:$0xff] }
 0x1bb   :  { %vm2514_vm1 = vcmp.lt.s32.totalorder %v4822_v10, 320 }
 0x1d5   :  { %v2862_v15 = vpop.f32.mrb[20].mxu0 }
 0x1d6   :  { %v1413_v47 = vpop.f32.mrb[20].mxu1  ;;  %v2863_v48 = vpop.f32.mrb[21].mxu0 }
 0x1d7   :  { %v2968_v54 = vpop.f32.mrb[21].mxu1  ;;  %v2864_v50 = vadd.f32 %v2863_v48, %v2862_v15  ;;  %v2865_v56 = vpop.f32.mrb[22].mxu0 }
 0x1d8   :  { %v1416_v44 = vpop.f32.mrb[22].mxu1  ;;  %v2866_v6 = vpop.f32.mrb[23].mxu0 }
 0x1d9   :  { %v2969_v57 = vpop.f32.mrb[23].mxu1  ;;  %v1374_v12 = vadd.f32 %v2864_v50, %v1334_v40 }
 0x1db   :  { %v1414_v58 = vadd.f32 %v1413_v47, %v1374_v12 }
 0x215   :  { %v2253_v59 = vpop.f32.mrb[24].mxu0 }
 0x216   :  { %v2294_v60 = vpop.f32.mrb[24].mxu1  ;;  %v2255_v0 = vpop.f32.mrb[25].mxu0 }
 0x217   :  { %v2295_v62 = vadd.f32 %v2294_v60, %v2253_v59  ;;  %v2296_v9 = vpop.f32.mrb[25].mxu1  ;;  %v2257_v14 = vpop.f32.mrb[26].mxu0 }
 0x218   :  { %v2297_v11 = vadd.f32 %v2296_v9, %v2255_v0  ;;  %v2298_v17 = vpop.f32.mrb[26].mxu1  ;;  %v2258_v61 = vpop.f32.mrb[27].mxu0 }
 0x219   :  { %v2299_v19 = vpop.f32.mrb[27].mxu1 }
 0x235   :  { %v2335_v22 = vpop.f32.mrb[28].mxu0 }
 0x236   :  { %v2893_v2 = vpop.f32.mrb[28].mxu1  ;;  %v2336_v24 = vadd.f32 %v2335_v22, %v2295_v62  ;;  %v2337_v27 = vpop.f32.mrb[29].mxu0 }
 0x237   :  { %v2894_v30 = vpop.f32.mrb[29].mxu1  ;;  %v2338_v33 = vadd.f32 %v2337_v27, %v2297_v11  ;;  %v2339_v43 = vpop.f32.mrb[30].mxu0 }
 0x238   :  { %v2895_v46 = vadd.f32 %v2894_v30, %v2893_v2  ;;  %v2896_v49 = vpop.f32.mrb[30].mxu1  ;;  %v2462_v39 = vadd.f32 %v2336_v24, %v1293_v29  ;;  %v2340_v53 = vpop.f32.mrb[31].mxu0 }
 0x239   :  { %v2897_v45 = vpop.f32.mrb[31].mxu1  ;;  %v2463_v37 = vadd.f32 %v2338_v33, %v1295_v8 }
 0x23a   :  { %v2482_v34 = vadd.f32 %v2470_v26, %v2462_v39 }
 0x23b   :  { %v2483_v52 = vadd.f32 %v2474_v42, %v2463_v37 }
 0x23d   :  { %v2488_v51 = vcombine.low %v2482_v34, %v2483_v52 }
 0x23f   :  { %v2495_v35 = vrot.slane %v2488_v51, %v4821_v32 }
 0x255   :  { %v2915_v55 = vpop.f32.mrb[32].mxu0 }
 0x256   :  { %v2456_v1 = vpop.f32.mrb[32].mxu1  ;;  %v2916_v13 = vpop.f32.mrb[33].mxu0 }
 0x257   :  { %v2988_v3 = vpop.f32.mrb[33].mxu1  ;;  %v2917_v63 = vadd.f32 %v2916_v13, %v2915_v55  ;;  %v2918_v16 = vpop.f32.mrb[34].mxu0 }
 0x258   :  { %v2459_v18 = vpop.f32.mrb[34].mxu1  ;;  %v2919_v21 = vpop.f32.mrb[35].mxu0 }
 0x259   :  { %v2989_v23 = vpop.f32.mrb[35].mxu1  ;;  %v2417_v7 = vadd.f32 %v2917_v63, %v2895_v46 }
 0x25b   :  { %v2457_v25 = vadd.f32 %v2456_v1, %v2417_v7 }
 0x25d   :  { %v2464_v29 = vadd.f32 %v2457_v25, %v1414_v58 }
 0x25f   :  { %v2484_v31 = vadd.f32 %v2478_v4, %v2464_v29 }
 0x261   :  { %v2502_v8 = vrot.slane %v2484_v31, %v4821_v32 }
 0x263   :  { %v2503_v36 = vcombine.low %v2495_v35, %v2502_v8 }
 0x265   :  { %v2510_v38 = vrot.slane %v2503_v36, %v4821_v32 }
 0x267   :  { %2516 = vst.msk [vmem:[#allocation2] sm:$0x7] %vm2514_vm1, %v2510_v38 }
 0x268   :  { %3374 = shalt.err (!%p3371_p4)
}
 0x269   :  { %s3375_s26 = scalar_lea.hbm %s4743_s4, 48 }
 0x26a   :  { %p3376_p5 = scmp.ne.s32.totalorder %s4743_s4, %s3375_s26  ;;  %p3379_p6 = scmp.lt.u32.totalorder %s3375_s26, %s4743_s4 }
 0x26c   :  { %p3381_p7 = pnand %p3379_p6, %p3376_p5 }
 0x26e   :  { %3384 = shalt.err (!%p3381_p7)
}
 0x26f   :  { %2526 = dma.vmem_to_hbm [thread:$0]  %s2524_s21, 48, %s4743_s4, [#allocation3]  }
 0x270   :  { %3385 = dma.done.wait [#allocation3], 48  }
 0x271   :  { %3386 = vsyncadd [#allocation3], 4294967248 }
 0x272   :  { %2530 = vsyncpa [#allocation3], 1 }

</bundles_post_ra>
